<compile_context>
chip_gen: v7x
topology: tpu7x:2x2x1
jax: 0.10.0
libtpu: 0.0.40
codegen_flags: <defaults>
</compile_context>

<pallas_src>
import functools

import jax
import jax.numpy as jnp
from jax.experimental import pallas as pl
from jax.experimental.pallas import tpu as pltpu

C   = 64                 # PReLU(64) in the module forces channels == 64
K   = 3                  # kernel_size
DIL = 2                  # dilation
PAD = (K - 1) * DIL      # causal left pad
EPS = 1e-5               # InstanceNorm1d default eps


def gated_dconv_kernel(x_ref, p_ref, w_ref, o_ref, y_ref, *, inv_t):
    """x_ref: (1, C, Tp) f32; p_ref: (2C, 4) f32 [alpha|gamma|beta|0];
       w_ref: (K, 2C, 2C) bf16 per-tap branch-block-diagonal weights;
       o_ref: (1, C, Tp) f32; y_ref: (2C, Tp) f32 VMEM scratch.
       inv_t = 1 / true_T (padded tail columns of x are zero)."""
    Tp = x_ref.shape[-1]
    x = x_ref[0]                                          # (C, Tp) f32

    alpha_m = p_ref[0:C, 0:1]                             # (C, 1)
    alpha_g = p_ref[C:2 * C, 0:1]
    gamma   = p_ref[:, 1:2]                               # (2C, 1)
    beta    = p_ref[:, 2:3]

    # 1) PReLU, written directly into the halves of the branch-stacked buffer
    #    (no xs = concat([x, x]) copy on the store slot).
    y_ref[0:C, :]     = jnp.where(x >= 0.0, x, alpha_m * x)
    y_ref[C:2 * C, :] = jnp.where(x >= 0.0, x, alpha_g * x)
    y = y_ref[...]                                        # (2C, Tp) f32

    # 2) InstanceNorm1d, one-pass stats in f32. Padded tail columns of y are zero,
    #    so sums over Tp equal sums over the true length; divide by true T.
    s1 = jnp.sum(y, axis=1, keepdims=True)                # (2C, 1)
    s2 = jnp.sum(y * y, axis=1, keepdims=True)
    mean = s1 * inv_t
    var = jnp.maximum(s2 * inv_t - mean * mean, 0.0)
    scale = jax.lax.rsqrt(var + EPS) * gamma              # (2C, 1)
    shift = beta - mean * scale
    yn = (y * scale + shift).astype(jnp.bfloat16)         # (2C, Tp) bf16
    # TODO(synk): on v6e/v7x (bf16 VPU) run this FMA in bf16; keep f32 on v5e.

    # 3) Causal dilated conv for both branches: K accumulating bf16 MXU dots
    #    against static slices of one small left-padded buffer (no (K*2C,T) slab).
    padded = jnp.concatenate(
        [jnp.zeros((2 * C, PAD), jnp.bfloat16), yn], axis=1)     # (2C, Tp+PAD)
    acc = jnp.dot(w_ref[0], padded[:, 0:Tp],
                  preferred_element_type=jnp.float32)            # (2C, Tp) f32
    for j in range(1, K):
        acc += jnp.dot(w_ref[j], padded[:, j * DIL: j * DIL + Tp],
                       preferred_element_type=jnp.float32)
    # TODO(synk): switch the shifted taps to pltpu.roll(yn, shift, axis=1) + iota
    # mask once a bundle dump confirms the staging stores disappear (XLU has slack).

    # 4) Gating: main * sigmoid(gate); divide stays on the EUP, not the VALU.
    g = acc[C:2 * C]
    sig = pl.reciprocal(1.0 + jnp.exp(-g), approx=True)
    o_ref[0] = (acc[0:C] * sig).astype(o_ref.dtype)


def gated_d_conv(x, am, gm, bm, wm, ag, gg, bg, wg):
    """x: (N, C, T) f32. Params in PyTorch layout:
       am/ag (PReLU slopes), gm/gg (IN gamma), bm/bg (IN beta): (C,)
       wm/wg (Conv1d weight, bias=False): (C_out, C_in, K)."""
    N, c, T = x.shape
    assert c == C

    # Lane-dense time axis: pad T up to a multiple of 128. Stats use the true T,
    # and the causal conv never reads right-padding for valid output columns.
    T_pad = ((T + 127) // 128) * 128
    x32 = x.astype(jnp.float32)
    if T_pad != T:
        x32 = jnp.pad(x32, ((0, 0), (0, 0), (0, T_pad - T)))
    # TODO(synk): accept/emit bf16 at the HBM boundary if the surrounding model
    # tolerates it (largest lever on HBM-bound v5e).

    # Packed per-channel params for the branch-stacked (2C, T) tensor: one DMA.
    alpha = jnp.concatenate([am, ag]).astype(jnp.float32)        # (2C,)
    gamma = jnp.concatenate([gm, gg]).astype(jnp.float32)
    beta  = jnp.concatenate([bm, bg]).astype(jnp.float32)
    params = jnp.stack([alpha, gamma, beta, jnp.zeros_like(alpha)], axis=1)  # (2C,4)

    # Per-tap, branch-block-diagonal weights (K, 2C, 2C) in bf16 for the MXU.
    wtap = jnp.zeros((K, 2 * C, 2 * C), jnp.float32)
    for j in range(K):
        wtap = wtap.at[j, 0:C, 0:C].set(wm[:, :, j])
        wtap = wtap.at[j, C:2 * C, C:2 * C].set(wg[:, :, j])
    wtap = wtap.astype(jnp.bfloat16)
    # TODO(synk): on v5e split into per-branch dots to drop the 50% structural
    # zeros (MXU is near the critical set there; on v6e/v7x it has slack).

    # Realistic per-step footprint (~3 KiB per time sample) with headroom, capped
    # at 40 MiB so v7x (64 MiB physical VMEM) keeps pipeline/compiler slack.
    vmem_limit = int(min(40 * 1024 * 1024, 4 * 1024 * 1024 + 5 * 1024 * T_pad))
    # TODO(synk): T-tiled two-pass variant (pass 1: per-(n,c) sum/sumsq; pass 2:
    # normalize + conv per T-tile with a PAD-sample left halo) for T >~ 8K and to
    # feed both v7x TensorCores when N is small.

    out = pl.pallas_call(
        functools.partial(gated_dconv_kernel, inv_t=1.0 / T),
        out_shape=jax.ShapeDtypeStruct((N, C, T_pad), jnp.float32),
        grid_spec=pltpu.PrefetchScalarGridSpec(
            num_scalar_prefetch=0,
            grid=(N,),
            in_specs=[
                pl.BlockSpec((1, C, T_pad), lambda n: (n, 0, 0)),      # x
                pl.BlockSpec((2 * C, 4), lambda n: (0, 0)),            # packed params
                pl.BlockSpec((K, 2 * C, 2 * C), lambda n: (0, 0, 0)),  # tap weights
            ],
            out_specs=pl.BlockSpec((1, C, T_pad), lambda n: (n, 0, 0)),
            scratch_shapes=[pltpu.VMEM((2 * C, T_pad), jnp.float32)],  # branch-stacked y
        ),
        compiler_params=pltpu.CompilerParams(
            dimension_semantics=("parallel",),
            vmem_limit_bytes=vmem_limit),
    )(x32, params, wtap)
    # TODO(synk): process NB>=2 batch elements per grid step for small T to
    # amortize the ~0.35 us per-step overhead.

    return out[:, :, :T] if T_pad != T else out


def _reference(x, am, gm, bm, wm, ag, gg, bg, wg):
    # Pure-JAX f32 reference mirroring the PyTorch forward (Conv1d bias=False).
    def branch(x, a, g, b, w):
        y = jnp.where(x >= 0, x, a[None, :, None] * x)
        mean = jnp.mean(y, axis=2, keepdims=True)
        var = jnp.mean((y - mean) ** 2, axis=2, keepdims=True)
        yn = (y - mean) * jax.lax.rsqrt(var + EPS)
        yn = yn * g[None, :, None] + b[None, :, None]
        ypad = jnp.pad(yn, ((0, 0), (0, 0), (PAD, 0)))
        return jax.lax.conv_general_dilated(
            ypad, w, window_strides=(1,), padding="VALID",
            rhs_dilation=(DIL,), dimension_numbers=("NCH", "OIH", "NCH"))
    m = branch(x, am, gm, bm, wm)
    gt = branch(x, ag, gg, bg, wg)
    return m * jax.nn.sigmoid(gt)


if __name__ == "__main__":
    N, T = 2, 32
    key = jax.random.PRNGKey(0)
    ks = jax.random.split(key, 9)

    x  = jax.random.normal(ks[0], (N, C, T), dtype=jnp.float32)
    am = 0.25 + 0.05 * jax.random.normal(ks[1], (C,), dtype=jnp.float32)   # PReLU slopes (main)
    ag = 0.25 + 0.05 * jax.random.normal(ks[2], (C,), dtype=jnp.float32)   # PReLU slopes (gate)
    gm = 1.0 + 0.1 * jax.random.normal(ks[3], (C,), dtype=jnp.float32)     # IN gamma (main)
    gg = 1.0 + 0.1 * jax.random.normal(ks[4], (C,), dtype=jnp.float32)     # IN gamma (gate)
    bm = 0.1 * jax.random.normal(ks[5], (C,), dtype=jnp.float32)           # IN beta  (main)
    bg = 0.1 * jax.random.normal(ks[6], (C,), dtype=jnp.float32)           # IN beta  (gate)
    wm = 0.1 * jax.random.normal(ks[7], (C, C, K), dtype=jnp.float32)      # Conv1d weight (main)
    wg = 0.1 * jax.random.normal(ks[8], (C, C, K), dtype=jnp.float32)      # Conv1d weight (gate)

    out = gated_d_conv(x, am, gm, bm, wm, ag, gg, bg, wg)
    out = jax.block_until_ready(out)

    ref = _reference(x, am, gm, bm, wm, ag, gg, bg, wg)
    assert out.shape == (N, C, T)
    # Tolerance reflects bf16 MXU inputs (f32 accumulation) and the approx
    # reciprocal in the sigmoid vs. a pure-f32 reference.
    err = float(jnp.max(jnp.abs(out - ref)))
    assert jnp.allclose(out, ref, atol=3e-2, rtol=3e-2), err

    print("KERNEL_OK")
</pallas_src>

<mosaic_0001>
module attributes {stable_mosaic.version = 11 : i64} {
  func.func @gated_dconv_kernel(%arg0: i32, %arg1: memref<1x64x128xf32, #tpu.memory_space<vmem>>, %arg2: memref<128x4xf32, #tpu.memory_space<vmem>>, %arg3: memref<3x128x128xbf16, #tpu.memory_space<vmem>>, %arg4: memref<1x64x128xf32, #tpu.memory_space<vmem>>, %arg5: memref<128x128xf32, #tpu.memory_space<vmem>>) attributes {dimension_semantics = [#tpu.dimension_semantics<parallel>], iteration_bounds = array<i64: 2>, scalar_prefetch = 0 : i64, scratch_operands = 1 : i64, tpu.core_type = #tpu.core_type<tc>, window_params = [{transform_indices = @transform_0, window_bounds = array<i64: 1, 64, 128>}, {pipeline_mode = #tpu.pipeline_mode<synchronous>, transform_indices = @transform_1, window_bounds = array<i64: 128, 4>}, {pipeline_mode = #tpu.pipeline_mode<synchronous>, transform_indices = @transform_2, window_bounds = array<i64: 3, 128, 128>}, {transform_indices = @transform_3, window_bounds = array<i64: 1, 64, 128>}]} {
    %c0 = arith.constant 0 : index
    %c0_0 = arith.constant 0 : index
    %c0_1 = arith.constant 0 : index
    %0 = vector.load %arg1[%c0, %c0_0, %c0_1] : memref<1x64x128xf32, #tpu.memory_space<vmem>>, vector<1x64x128xf32>
    %1 = vector.shape_cast %0 : vector<1x64x128xf32> to vector<64x128xf32>
    %c0_2 = arith.constant 0 : index
    %c0_3 = arith.constant 0 : index
    %2 = vector.load %arg2[%c0_2, %c0_3] : memref<128x4xf32, #tpu.memory_space<vmem>>, vector<64x1xf32>
    %c64 = arith.constant 64 : index
    %c0_4 = arith.constant 0 : index
    %3 = vector.load %arg2[%c64, %c0_4] : memref<128x4xf32, #tpu.memory_space<vmem>>, vector<64x1xf32>
    %c0_5 = arith.constant 0 : index
    %c1 = arith.constant 1 : index
    %4 = vector.load %arg2[%c0_5, %c1] : memref<128x4xf32, #tpu.memory_space<vmem>>, vector<128x1xf32>
    %c0_6 = arith.constant 0 : index
    %c2 = arith.constant 2 : index
    %5 = vector.load %arg2[%c0_6, %c2] : memref<128x4xf32, #tpu.memory_space<vmem>>, vector<128x1xf32>
    %cst = arith.constant 0.000000e+00 : f32
    %6 = vector.broadcast %cst : f32 to vector<64x128xf32>
    %7 = arith.cmpf oge, %1, %6 : vector<64x128xf32>
    %8 = vector.broadcast %2 : vector<64x1xf32> to vector<64x128xf32>
    %9 = arith.mulf %8, %1 : vector<64x128xf32>
    %10 = arith.select %7, %1, %9 : vector<64x128xi1>, vector<64x128xf32>
    %c0_7 = arith.constant 0 : index
    %c0_8 = arith.constant 0 : index
    %11 = vector.load %arg5[%c0_7, %c0_8] : memref<128x128xf32, #tpu.memory_space<vmem>>, vector<64x128xf32>
    tpu.vector_store %arg5[%c0_7, %c0_8], %10 {strides = array<i32>} : memref<128x128xf32, #tpu.memory_space<vmem>>, vector<64x128xf32>,
    %cst_9 = arith.constant 0.000000e+00 : f32
    %12 = vector.broadcast %cst_9 : f32 to vector<64x128xf32>
    %13 = arith.cmpf oge, %1, %12 : vector<64x128xf32>
    %14 = vector.broadcast %3 : vector<64x1xf32> to vector<64x128xf32>
    %15 = arith.mulf %14, %1 : vector<64x128xf32>
    %16 = arith.select %13, %1, %15 : vector<64x128xi1>, vector<64x128xf32>
    %c64_10 = arith.constant 64 : index
    %c0_11 = arith.constant 0 : index
    %17 = vector.load %arg5[%c64_10, %c0_11] : memref<128x128xf32, #tpu.memory_space<vmem>>, vector<64x128xf32>
    tpu.vector_store %arg5[%c64_10, %c0_11], %16 {strides = array<i32>} : memref<128x128xf32, #tpu.memory_space<vmem>>, vector<64x128xf32>,
    %c0_12 = arith.constant 0 : index
    %c0_13 = arith.constant 0 : index
    %18 = vector.load %arg5[%c0_12, %c0_13] : memref<128x128xf32, #tpu.memory_space<vmem>>, vector<128x128xf32>
    %cst_14 = arith.constant dense<0.000000e+00> : vector<128xf32>
    %19 = vector.multi_reduction <add>, %18, %cst_14 [1] : vector<128x128xf32> to vector<128xf32>
    %20 = vector.shape_cast %19 : vector<128xf32> to vector<128x1xf32>
    %21 = arith.mulf %18, %18 : vector<128x128xf32>
    %cst_15 = arith.constant dense<0.000000e+00> : vector<128xf32>
    %22 = vector.multi_reduction <add>, %21, %cst_15 [1] : vector<128x128xf32> to vector<128xf32>
    %23 = vector.shape_cast %22 : vector<128xf32> to vector<128x1xf32>
    %cst_16 = arith.constant 3.125000e-02 : f32
    %24 = vector.broadcast %cst_16 : f32 to vector<128x1xf32>
    %25 = arith.mulf %20, %24 : vector<128x1xf32>
    %cst_17 = arith.constant 3.125000e-02 : f32
    %26 = vector.broadcast %cst_17 : f32 to vector<128x1xf32>
    %27 = arith.mulf %23, %26 : vector<128x1xf32>
    %28 = arith.mulf %25, %25 : vector<128x1xf32>
    %29 = arith.subf %27, %28 : vector<128x1xf32>
    %cst_18 = arith.constant 0.000000e+00 : f32
    %30 = vector.broadcast %cst_18 : f32 to vector<128x1xf32>
    %31 = arith.maximumf %29, %30 : vector<128x1xf32>
    %cst_19 = arith.constant 9.99999974E-6 : f32
    %32 = vector.broadcast %cst_19 : f32 to vector<128x1xf32>
    %33 = arith.addf %31, %32 : vector<128x1xf32>
    %34 = math.rsqrt %33 : vector<128x1xf32>
    %35 = arith.mulf %34, %4 : vector<128x1xf32>
    %36 = arith.mulf %25, %35 : vector<128x1xf32>
    %37 = arith.subf %5, %36 : vector<128x1xf32>
    %38 = vector.broadcast %35 : vector<128x1xf32> to vector<128x128xf32>
    %39 = arith.mulf %18, %38 : vector<128x128xf32>
    %40 = vector.broadcast %37 : vector<128x1xf32> to vector<128x128xf32>
    %41 = arith.addf %39, %40 : vector<128x128xf32>
    %42 = arith.truncf %41 : vector<128x128xf32> to vector<128x128xbf16>
    %cst_20 = arith.constant 0.000000e+00 : bf16
    %43 = vector.broadcast %cst_20 : bf16 to vector<128x4xbf16>
    %44 = tpu.concatenate %43, %42 in 1 : vector<128x4xbf16>, vector<128x128xbf16> -> vector<128x132xbf16>
    %c0_21 = arith.constant 0 : index
    %c0_22 = arith.constant 0 : index
    %c0_23 = arith.constant 0 : index
    %45 = vector.load %arg3[%c0_21, %c0_22, %c0_23] : memref<3x128x128xbf16, #tpu.memory_space<vmem>>, vector<1x128x128xbf16>
    %46 = vector.shape_cast %45 : vector<1x128x128xbf16> to vector<128x128xbf16>
    %47 = vector.extract_strided_slice %44 {offsets = [0, 0], sizes = [128, 128], strides = [1, 1]} : vector<128x132xbf16> to vector<128x128xbf16>
    %cst_24 = arith.constant dense<0.000000e+00> : vector<128x128xf32>
    %48 = tpu.matmul %46, %47, %cst_24 {dimension_numbers = #tpu.dot_dimension_numbers<[1], [0], [0], [1], [0, 0, 1, 1], [], []>} : vector<128x128xbf16>, vector<128x128xbf16>, vector<128x128xf32> -> vector<128x128xf32>
    %c1_25 = arith.constant 1 : index
    %c0_26 = arith.constant 0 : index
    %c0_27 = arith.constant 0 : index
    %49 = vector.load %arg3[%c1_25, %c0_26, %c0_27] : memref<3x128x128xbf16, #tpu.memory_space<vmem>>, vector<1x128x128xbf16>
    %50 = vector.shape_cast %49 : vector<1x128x128xbf16> to vector<128x128xbf16>
    %51 = vector.extract_strided_slice %44 {offsets = [0, 2], sizes = [128, 128], strides = [1, 1]} : vector<128x132xbf16> to vector<128x128xbf16>
    %cst_28 = arith.constant dense<0.000000e+00> : vector<128x128xf32>
    %52 = tpu.matmul %50, %51, %cst_28 {dimension_numbers = #tpu.dot_dimension_numbers<[1], [0], [0], [1], [0, 0, 1, 1], [], []>} : vector<128x128xbf16>, vector<128x128xbf16>, vector<128x128xf32> -> vector<128x128xf32>
    %53 = arith.addf %48, %52 : vector<128x128xf32>
    %c2_29 = arith.constant 2 : index
    %c0_30 = arith.constant 0 : index
    %c0_31 = arith.constant 0 : index
    %54 = vector.load %arg3[%c2_29, %c0_30, %c0_31] : memref<3x128x128xbf16, #tpu.memory_space<vmem>>, vector<1x128x128xbf16>
    %55 = vector.shape_cast %54 : vector<1x128x128xbf16> to vector<128x128xbf16>
    %56 = vector.extract_strided_slice %44 {offsets = [0, 4], sizes = [128, 128], strides = [1, 1]} : vector<128x132xbf16> to vector<128x128xbf16>
    %cst_32 = arith.constant dense<0.000000e+00> : vector<128x128xf32>
    %57 = tpu.matmul %55, %56, %cst_32 {dimension_numbers = #tpu.dot_dimension_numbers<[1], [0], [0], [1], [0, 0, 1, 1], [], []>} : vector<128x128xbf16>, vector<128x128xbf16>, vector<128x128xf32> -> vector<128x128xf32>
    %58 = arith.addf %53, %57 : vector<128x128xf32>
    %59 = vector.extract_strided_slice %58 {offsets = [64, 0], sizes = [64, 128], strides = [1, 1]} : vector<128x128xf32> to vector<64x128xf32>
    %cst_33 = arith.constant 0.000000e+00 : f32
    %60 = vector.broadcast %cst_33 : f32 to vector<64x128xf32>
    %61 = arith.subf %60, %59 : vector<64x128xf32>
    %62 = math.exp %61 : vector<64x128xf32>
    %cst_34 = arith.constant 1.000000e+00 : f32
    %63 = vector.broadcast %cst_34 : f32 to vector<64x128xf32>
    %64 = arith.addf %63, %62 : vector<64x128xf32>
    %65 = tpu.reciprocal %64 {approx = true} : vector<64x128xf32> -> vector<64x128xf32>
    %66 = vector.extract_strided_slice %58 {offsets = [0, 0], sizes = [64, 128], strides = [1, 1]} : vector<128x128xf32> to vector<64x128xf32>
    %67 = arith.mulf %66, %65 : vector<64x128xf32>
    %c0_35 = arith.constant 0 : index
    %c0_36 = arith.constant 0 : index
    %c0_37 = arith.constant 0 : index
    %68 = vector.load %arg4[%c0_35, %c0_36, %c0_37] : memref<1x64x128xf32, #tpu.memory_space<vmem>>, vector<1x64x128xf32>
    %69 = vector.shape_cast %68 : vector<1x64x128xf32> to vector<64x128xf32>
    %70 = vector.shape_cast %67 : vector<64x128xf32> to vector<1x64x128xf32>
    tpu.vector_store %arg4[%c0_35, %c0_36, %c0_37], %70 {strides = array<i32>} : memref<1x64x128xf32, #tpu.memory_space<vmem>>, vector<1x64x128xf32>,
    return
  }
  func.func @transform_0(%arg0: i32) -> (i32, i32, i32) {
    %c0_i32 = arith.constant 0 : i32
    %c0_i32_0 = arith.constant 0 : i32
    %c0_i32_1 = arith.constant 0 : i32
    return %arg0, %c0_i32, %c0_i32_0 : i32, i32, i32
  }
  func.func @transform_1(%arg0: i32) -> (i32, i32) {
    %c0_i32 = arith.constant 0 : i32
    %c0_i32_0 = arith.constant 0 : i32
    %c0_i32_1 = arith.constant 0 : i32
    return %c0_i32, %c0_i32_0 : i32, i32
  }
  func.func @transform_2(%arg0: i32) -> (i32, i32, i32) {
    %c0_i32 = arith.constant 0 : i32
    %c0_i32_0 = arith.constant 0 : i32
    %c0_i32_1 = arith.constant 0 : i32
    %c0_i32_2 = arith.constant 0 : i32
    return %c0_i32, %c0_i32_0, %c0_i32_1 : i32, i32, i32
  }
  func.func @transform_3(%arg0: i32) -> (i32, i32, i32) {
    %c0_i32 = arith.constant 0 : i32
    %c0_i32_0 = arith.constant 0 : i32
    %c0_i32_1 = arith.constant 0 : i32
    return %arg0, %c0_i32, %c0_i32_0 : i32, i32, i32
  }
}

</mosaic_0001>

<bundles_post_ra>
// kernel: tpu_custom_call.1
= control target key start
LH: loop header
LB: loop body
LE: loop exit
PB: predicated region body
PF: predicated region fallthrough
CT: control target
= control target key end

     0   :  { %8 = vsyncpa [#allocation4], 0  ;;  %s2829_s0 = inlined_call_operand.vmem [shape: f32[2,64,128], index: 0, kind: input, shape index: {}]   ;;  %s2830_s1 = inlined_call_operand.vmem [shape: f32[128,4], index: 1, kind: input, shape index: {}]   ;;  %s2831_s2 = inlined_call_operand.hbm [shape: bf16[3,128,128], index: 2, kind: input, shape index: {}]   ;;  %s2832_s3 = inlined_call_operand.hbm [shape: f32[2,64,128], index: 3, kind: output, shape index: {}]  }
   0x1   :  { %9 = vsyncpa [#allocation5], 0 }
   0x2   :  { %11 = vsyncpa [#allocation5 + $0x1], 0  ;;  %s2198_s12 = smov 0   ;;  %s2200_s13 = smov 0  }
   0x3   :  { %s2202_s14 = smov 0   ;;  %s2204_s15 = smov 0  }
   0x4 LB: > { %s2219_s16 = sadd.s32 4294967295, %s2163_s15   ;;  %s1666_s17 = sadd.s32 4294967294, %s2163_s15   ;;  %s2163_s15 = sphi %s2204_s15, %s2871_s15   ;;  %s2159_s14 = sphi %s2202_s14, %s2870_s14   ;;  %s2155_s13 = sphi %s2200_s13, %s2869_s13   ;;  %s2151_s12 = sphi %s2198_s12, %s2868_s12  }
   0x5   : > { %s2223_s18 = sadd.s32 1, %s2163_s15   ;;  %s92_s19 = sadd.s32 1, %s2159_s14 }
   0x6   : > { %s89_s20 = ssub.s32 %s2163_s15, %s2223_s18  ;;  %p102_p0 = scmp.ne.s32.totalorder %s2159_s14, %s2155_s13 }
   0x7   : > { %p90_p1 = scmp.eq.s32.totalorder %s89_s20, 0  ;;  %p103_p2 = scmp.eq.s32.totalorder %s2219_s16, 1 }
   0x8   : > { %p108_p3 = scmp.ne.s32.totalorder %s2155_s13, %s2151_s12  ;;  %p109_p4 = scmp.eq.s32.totalorder %s1666_s17, 1 }
   0x9   : > { %s2234_s21 = scalar_select %p90_p1, %s2159_s14, %s92_s19  }
   0xa   : > { %p2236_p5 = por %p103_p2, %p102_p0  ;;  %p2240_p6 = por %p109_p4, %p108_p3 }
   0xb   : > { %p1667_p7 = scmp.ge.s32.totalorder %s2163_s15, 1  ;;  %p116_p8 = scmp.lt.s32.totalorder %s2163_s15, 3 }
   0xc   : > { %s2843_s22 = scalar_select %p2236_p5, 1, 0 }
   0xd   : > { %s2844_s23 = scalar_select %p2240_p6, 1, 0 }
   0xe   : > { %p2833_p9 = scmp.eq.s32.totalorder %s2219_s16, 0  ;;  %p2247_p10 = pnand %p1667_p7, %p116_p8 }
   0xf   : > { %s2165_s25 = smov [#allocation3]   ;;  %s2069_s30 = scalar_lea.hbm %s2831_s2, 3072 }
  0x10   : > { %s2845_s24 = scalar_select %p2247_p10, 1, 0 }
  0x11   : > { %s131_s26 = sshll.u32 %s2165_s25, 4  ;;  %p1920_p11 = pneg %p2247_p10  ;;  %s132_s26 = int_to_ptr.vmem [resolvable:$true] %s131_s26 }
  0x12   : > { %p2070_p13 = scmp.ne.s32.totalorder %s2831_s2, %s2069_s30  ;;  %p2076_p3 = scmp.lt.u32.totalorder %s2069_s30, %s2831_s2 }
  0x13   : > { %p2255_p12 = pnand %p2833_p9, %p1920_p11 }
  0x15   : > { %p2071_p0 = pneg %p2255_p12 }
  0x17   : > { %p2072_p1 = pnand %p2071_p0, %p2070_p13 }
  0x19   : > { %p2073_p2 = pneg %p2072_p1 }
  0x1b   : > { %p2078_p4 = pnand %p2076_p3, %p2073_p2 }
  0x1d   : > { %2081 = shalt.err (!%p2078_p4)
}
  0x1e   : > { %s2082_s8 = scalar_lea.vmem %s132_s26, 3072  ;;  %p2090_p9 = scmp.lt.s32.totalorder %s132_s26, %s132_s26 }
  0x1f   : > { %p2083_p7 = scmp.ne.s32.totalorder %s132_s26, %s2082_s8  ;;  %p2091_p6 = scmp.lt.s32.totalorder %s2082_s8, %s2082_s8 }
  0x21   : > { %p2085_p8 = pnand %p2083_p7, %p2071_p0  ;;  %p2092_p5 = por %p2091_p6, %p2090_p9 }
  0x23   : > { %p2086_p11 = pneg %p2085_p8 }
  0x25   : > { %p2093_p10 = pnand %p2092_p5, %p2086_p11 }
  0x27   : > { %2096 = shalt.err (!%p2093_p10)
}
  0x28   : > { %s2166_s9 = smov 64   ;;  %s2167_s10 = smov 4  }
  0x29   : > { %1923 = dma.hbm_to_vmem [thread:$0]  (!%p2255_p12), %s2831_s2, 3072, %s132_s26, [#allocation4], %s2166_s9, %s2166_s9, %s2167_s10  }
  0x2a   : > { %p2847_p13 = scmp.ne.s32.totalorder %s2845_s24, 0 }
  0x2c   : > { %155 = sbr.rel (%p2847_p13) target bundleno = 1238 (0x4d6), region = 32 }
  0x33   : > { %p2848_p1 = scmp.eq.s32.totalorder %s2219_s16, 0 }
  0x35   : > { %2142 = dma.done.wait (%p2848_p1), [#allocation4], 3072   ;;  %p2849_p0 = pmov %p2848_p1 }
  0x36   : > { %v2168_v0 = vmov 0   ;;  %v2284_v1 = vld [vmem:[%s2830_s1 + $0x10] sm:$0xff]  ;;  %v2289_v2 = vld [vmem:[%s2830_s1] sm:$0xff]  ;;  %v2296_v3 = vld [vmem:[%s2830_s1 + $0x18] sm:$0xff]  ;;  %p179_p5 = scmp.lt.s32.totalorder %s2219_s16, 1  ;;  %s2170_s20 = smov 1  }
  0x37   : > { %2144 = vsyncadd (%p2849_p0), [#allocation4], 4294964224  ;;  %1976 = vset.pattern.permute.xlu1 %v2168_v0  ;;  %1975 = vset.pattern.permute.xlu0 %v2168_v0  ;;  %v2301_v4 = vld [vmem:[%s2830_s1 + $0x8] sm:$0xff]  ;;  %v2313_v6 = vld [vmem:[%s2830_s1 + $0x20] sm:$0xff]  ;;  %s2172_s25 = smov 4   ;;  %vm889_vm8 = vcmask 31744  }
  0x38   : > { %229 = vperm.xlu1 %1976, %v2284_v1   ;;  %219 = vperm.xlu0 %1975, %v2289_v2   ;;  %v2308_v5 = vld [vmem:[%s2830_s1 + $0x28] sm:$0xff]  ;;  %v2318_v7 = vld [vmem:[%s2830_s1 + $0x38] sm:$0xff]  ;;  %v2325_v8 = vld [vmem:[%s2830_s1 + $0x30] sm:$0xff]  ;;  %s180_s9 = scalar_select %p179_p5, %s2219_s16, 1  ;;  %vm1036_vm10 = vcmask 1031168   ;;  %vm1392_vm11 = vcmask 1014784  }
  0x39   : > { %v2330_v9 = vld [vmem:[%s2830_s1 + $0x48] sm:$0xff]  ;;  %v2337_v10 = vld [vmem:[%s2830_s1 + $0x40] sm:$0xff]  ;;  %v2342_v11 = vld [vmem:[%s2830_s1 + $0x58] sm:$0xff]  ;;  %s2173_s27 = smov 126   ;;  %s2174_s24 = smov 124  }
  0x3a   : > { %v2347_v12 = vld [vmem:[%s2830_s1 + $0x50] sm:$0xff]  ;;  %v2354_v13 = vld [vmem:[%s2830_s1 + $0x68] sm:$0xff]  ;;  %v2359_v14 = vld [vmem:[%s2830_s1 + $0x60] sm:$0xff]  ;;  %s1720_s10 = sshll.u32 %s180_s9, 6  ;;  %s176_s26 = sand.u32 1, %s2155_s13  }
  0x3b   : > { %v2368_v15 = vld [vmem:[%s2830_s1 + $0x78] sm:$0xff]  ;;  %v2373_v16 = vld [vmem:[%s2830_s1 + $0x70] sm:$0xff]  ;;  %s2382_s19 = scalar_lea.vmem %s2829_s0, %s1720_s10  ;;  %vm2675_vm9 = vmneg %vm889_vm8  ;;  %s1672_s28 = sshll.u32 %s176_s26, 6 }
  0x3c   : > { %234 = vperm.xlu1 %1976, %v2296_v3   ;;  %224 = vperm.xlu0 %1975, %v2301_v4   ;;  %v185_v17 = vld [vmem:[%s2382_s19] sm:$0xff]  ;;  %v188_v21 = vld [vmem:[%s2382_s19 + $0x18] sm:$0xff]  ;;  %v186_v22 = vld [vmem:[%s2382_s19 + $0x8] sm:$0xff]  ;;  %s178_s29 = scalar_lea.vmem [#allocation6], %s1672_s28  ;;  %s1721_s30 = sshll.u32 %s2219_s16, 10 }
  0x3d   : > { %vm209_vm0 = vcmp.ge.f32.partialorder %v185_v17, 0.0  ;;  %v187_v24 = vld [vmem:[%s2382_s19 + $0x10] sm:$0xff]  ;;  %vm210_vm1 = vcmp.ge.f32.partialorder %v186_v22, 0.0  ;;  %vm212_vm2 = vcmp.ge.f32.partialorder %v188_v21, 0.0  ;;  %v190_v29 = vld [vmem:[%s2382_s19 + $0x28] sm:$0xff]  ;;  %v189_v35 = vld [vmem:[%s2382_s19 + $0x20] sm:$0xff]  ;;  %s2781_s7 = scalar_lea.hbm %s2832_s3, %s1721_s30 }
  0x3e   : > { %vm211_vm3 = vcmp.ge.f32.partialorder %v187_v24, 0.0  ;;  %vm214_vm4 = vcmp.ge.f32.partialorder %v190_v29, 0.0  ;;  %v192_v37 = vld [vmem:[%s2382_s19 + $0x38] sm:$0xff]  ;;  %v191_v43 = vld [vmem:[%s2382_s19 + $0x30] sm:$0xff]  ;;  %vm213_vm5 = vcmp.ge.f32.partialorder %v189_v35, 0.0  ;;  %s1592_s4 = sshll.u32 %s178_s29, 4  ;;  %s2783_s4 = int_to_ptr.vmem [resolvable:$true] %s1592_s4 }
  0x3f   : > { %vm216_vm6 = vcmp.ge.f32.partialorder %v192_v37, 0.0  ;;  %vm215_vm7 = vcmp.ge.f32.partialorder %v191_v43, 0.0  ;;  %s2788_s16 = scalar_lea.sflag [#allocation5], %s176_s26  ;;  %s2097_s8 = scalar_lea.vmem %s2783_s4, 1024 }
  0x40   : > { %244 = vperm.xlu1 %1976, %v2308_v5   ;;  %239 = vperm.xlu0 %1975, %v2313_v6   ;;  %p2098_p6 = scmp.ne.s32.totalorder %s2783_s4, %s2097_s8  ;;  %p2866_p9 = scmp.ne.s32.totalorder %s2843_s22, 0 }
  0x41   : > { %s2175_s9 = smov [#allocation6]  }
  0x42   : > { %p2099_p10 = pnand %p2098_p6, %p2866_p9  ;;  %s2101_s10 = sshll.u32 %s2175_s9, 4  ;;  %s2102_s10 = int_to_ptr.vmem [resolvable:$false] %s2101_s10 }
  0x43   : > { %s2103_s11 = scalar_lea.vmem %s2102_s10, 2048  ;;  %p2104_p2 = scmp.lt.s32.totalorder %s2783_s4, %s2102_s10 }
  0x44   : > { %254 = vperm.xlu1 %1976, %v2318_v7   ;;  %249 = vperm.xlu0 %1975, %v2325_v8   ;;  %p2100_p12 = pneg %p2099_p10  ;;  %p2105_p3 = scmp.lt.s32.totalorder %s2103_s11, %s2097_s8 }
  0x46   : > { %p2106_p4 = por %p2105_p3, %p2104_p2 }
  0x48   : > { %288 = vperm.xlu1 %1976, %v2330_v9   ;;  %283 = vperm.xlu0 %1975, %v2337_v10   ;;  %p2107_p7 = pnand %p2106_p4, %p2100_p12 }
  0x4c   : > { %298 = vperm.xlu1 %1976, %v2342_v11   ;;  %293 = vperm.xlu0 %1975, %v2347_v12  }
  0x50   : > { %308 = vperm.xlu1 %1976, %v2354_v13   ;;  %303 = vperm.xlu0 %1975, %v2359_v14  }
  0x54   : > { %318 = vperm.xlu1 %1976, %v2368_v15   ;;  %313 = vperm.xlu0 %1975, %v2373_v16  }
  0xb7   : > { %v230_v18 = vpop.permute.xlu1 %229  ;;  %v220_v19 = vpop.permute.xlu0 %219 }
  0xb8   : > { %v257_v20 = vmul.f32 %v220_v19, %v185_v17  ;;  %v259_v30 = vmul.f32 %v230_v18, %v187_v24 }
  0xba   : > { %v2388_v23 = vsel %vm209_vm0, %v185_v17, %v257_v20  ;;  %v2404_v39 = vsel %vm211_vm3, %v187_v24, %v259_v30 }
  0xbb   : > { %v235_v25 = vpop.permute.xlu1 %234  ;;  %v225_v26 = vpop.permute.xlu0 %224  ;;  %361 = vadd.xlane.f32.xlu0 %v2388_v23 }
  0xbc   : > { %v260_v27 = vmul.f32 %v235_v25, %v188_v21  ;;  %v258_v28 = vmul.f32 %v225_v26, %v186_v22 }
  0xbe   : > { %v2394_v31 = vsel %vm210_vm1, %v186_v22, %v258_v28  ;;  %v2397_v32 = vsel %vm212_vm2, %v188_v21, %v260_v27  ;;  %v395_v27 = vmul.f32 %v2404_v39, %v2404_v39 }
  0xbf   : > { %v245_v33 = vpop.permute.xlu1 %244  ;;  %v240_v34 = vpop.permute.xlu0 %239  ;;  %363 = vadd.xlane.f32.xlu1 %v2394_v31  ;;  %367 = vadd.xlane.f32.xlu0 %v2397_v32  ;;  %v394_v28 = vmul.f32 %v2394_v31, %v2394_v31  ;;  %v396_v30 = vmul.f32 %v2397_v32, %v2397_v32 }
  0xc0   : > { %v262_v36 = vmul.f32 %v245_v33, %v190_v29  ;;  %v261_v38 = vmul.f32 %v240_v34, %v189_v35 }
  0xc2   : > { %v2407_v40 = vsel %vm214_vm4, %v190_v29, %v262_v36  ;;  %v2413_v46 = vsel %vm213_vm5, %v189_v35, %v261_v38 }
  0xc3   : > { %v255_v41 = vpop.permute.xlu1 %254  ;;  %v250_v42 = vpop.permute.xlu0 %249  ;;  %365 = vadd.xlane.f32.xlu1 %v2404_v39  ;;  %371 = vadd.xlane.f32.xlu0 %v2407_v40  ;;  %v398_v34 = vmul.f32 %v2407_v40, %v2407_v40 }
  0xc4   : > { %v264_v44 = vmul.f32 %v255_v41, %v192_v37  ;;  %v263_v45 = vmul.f32 %v250_v42, %v191_v43 }
  0xc6   : > { %v2416_v47 = vsel %vm216_vm6, %v192_v37, %v264_v44  ;;  %v2421_v52 = vsel %vm215_vm7, %v191_v43, %v263_v45 }
  0xc7   : > { %v289_v48 = vpop.permute.xlu1 %288  ;;  %v284_v49 = vpop.permute.xlu0 %283  ;;  %369 = vadd.xlane.f32.xlu1 %v2413_v46  ;;  %375 = vadd.xlane.f32.xlu0 %v2416_v47  ;;  %v399_v33 = vmul.f32 %v2421_v52, %v2421_v52  ;;  %v400_v36 = vmul.f32 %v2416_v47, %v2416_v47 }
  0xc8   : > { %v322_v50 = vmul.f32 %v289_v48, %v186_v22  ;;  %v321_v51 = vmul.f32 %v284_v49, %v185_v17  ;;  %v2169_v48 = vmov 1  }
  0xc9   : > { %1978 = vset.pattern.permute.xlu1 %v2169_v48  ;;  %1977 = vset.pattern.permute.xlu0 %v2169_v48 }
  0xca   : > { %v2424_v53 = vsel %vm210_vm1, %v186_v22, %v322_v50  ;;  %v2429_v58 = vsel %vm209_vm0, %v185_v17, %v321_v51 }
  0xcb   : > { %2850 = vst [vmem:[#allocation9_spill] sm:$0xff] %v2424_v53  ;;  %v299_v54 = vpop.permute.xlu1 %298  ;;  %v294_v55 = vpop.permute.xlu0 %293  ;;  %373 = vadd.xlane.f32.xlu1 %v2421_v52  ;;  %379 = vadd.xlane.f32.xlu0 %v2424_v53  ;;  %v402_v38 = vmul.f32 %v2424_v53, %v2424_v53 }
  0xcc   : > { %v324_v56 = vmul.f32 %v299_v54, %v188_v21  ;;  %v323_v57 = vmul.f32 %v294_v55, %v187_v24 }
  0xce   : > { %v2432_v59 = vsel %vm212_vm2, %v188_v21, %v324_v56  ;;  %v2437_v0 = vsel %vm211_vm3, %v187_v24, %v323_v57  ;;  %v393_v24 = vmul.f32 %v2388_v23, %v2388_v23 }
  0xcf   : > { %2851 = vst [vmem:[#allocation10_spill] sm:$0xff] %v2432_v59  ;;  %v309_v60 = vpop.permute.xlu1 %308  ;;  %v304_v61 = vpop.permute.xlu0 %303  ;;  %377 = vadd.xlane.f32.xlu1 %v2429_v58  ;;  %383 = vadd.xlane.f32.xlu0 %v2432_v59  ;;  %2852 = vst [vmem:[#allocation11_spill] sm:$0xff] %v2437_v0  ;;  %v404_v42 = vmul.f32 %v2432_v59, %v2432_v59 }
  0xd0   : > { %v326_v62 = vmul.f32 %v309_v60, %v190_v29  ;;  %v325_v63 = vmul.f32 %v304_v61, %v189_v35 }
  0xd2   : > { %v2440_v18 = vsel %vm214_vm4, %v190_v29, %v326_v62  ;;  %v2445_v22 = vsel %vm213_vm5, %v189_v35, %v325_v63  ;;  %v397_v29 = vmul.f32 %v2413_v46, %v2413_v46  ;;  %v401_v35 = vmul.f32 %v2429_v58, %v2429_v58 }
  0xd3   : > { %2853 = vst [vmem:[#allocation12_spill] sm:$0xff] %v2440_v18  ;;  %v319_v19 = vpop.permute.xlu1 %318  ;;  %v314_v17 = vpop.permute.xlu0 %313  ;;  %381 = vadd.xlane.f32.xlu1 %v2437_v0  ;;  %387 = vadd.xlane.f32.xlu0 %v2440_v18  ;;  %2854 = vst [vmem:[#allocation13_spill] sm:$0xff] %v2445_v22  ;;  %v405_v41 = vmul.f32 %v2445_v22, %v2445_v22  ;;  %v406_v44 = vmul.f32 %v2440_v18, %v2440_v18 }
  0xd4   : > { %v328_v20 = vmul.f32 %v319_v19, %v192_v37  ;;  %v327_v21 = vmul.f32 %v314_v17, %v191_v43 }
  0xd6   : > { %v2448_v25 = vsel %vm216_vm6, %v192_v37, %v328_v20  ;;  %v2455_v26 = vsel %vm215_vm7, %v191_v43, %v327_v21  ;;  %v403_v37 = vmul.f32 %v2437_v0, %v2437_v0 }
  0xd7   : > { %2855 = vst [vmem:[#allocation14_spill] sm:$0xff] %v2448_v25  ;;  %385 = vadd.xlane.f32.xlu1 %v2445_v22  ;;  %391 = vadd.xlane.f32.xlu0 %v2448_v25  ;;  %2856 = vst [vmem:[#allocation15_spill] sm:$0xff] %v2455_v26  ;;  %v407_v43 = vmul.f32 %v2455_v26, %v2455_v26  ;;  %v408_v45 = vmul.f32 %v2448_v25, %v2448_v25 }
  0xdb   : > { %389 = vadd.xlane.f32.xlu1 %v2455_v26  ;;  %409 = vadd.xlane.f32.xlu0 %v393_v24 }
  0xdf   : > { %413 = vadd.xlane.f32.xlu1 %v395_v27  ;;  %411 = vadd.xlane.f32.xlu0 %v394_v28 }
  0xe3   : > { %417 = vadd.xlane.f32.xlu1 %v397_v29  ;;  %415 = vadd.xlane.f32.xlu0 %v396_v30 }
  0xe7   : > { %421 = vadd.xlane.f32.xlu1 %v399_v33  ;;  %419 = vadd.xlane.f32.xlu0 %v398_v34 }
  0xeb   : > { %425 = vadd.xlane.f32.xlu1 %v401_v35  ;;  %423 = vadd.xlane.f32.xlu0 %v400_v36 }
  0xef   : > { %429 = vadd.xlane.f32.xlu1 %v403_v37  ;;  %427 = vadd.xlane.f32.xlu0 %v402_v38 }
  0xf3   : > { %433 = vadd.xlane.f32.xlu1 %v405_v41  ;;  %431 = vadd.xlane.f32.xlu0 %v404_v42 }
  0xf7   : > { %437 = vadd.xlane.f32.xlu1 %v407_v43  ;;  %435 = vadd.xlane.f32.xlu0 %v406_v44 }
  0xfb   : > { %439 = vadd.xlane.f32.xlu0 %v408_v45 }
 0x148   : > { %v362_v49 = vpop.xlane.xlu0 %361 }
 0x149   : > { %v2496_v24 = vmul.f32 0.03125, %v362_v49 }
 0x14b   : > { %v473_v30 = vmul.f32 %v2496_v24, %v2496_v24 }
 0x14c   : > { %v364_v50 = vpop.xlane.xlu1 %363  ;;  %v368_v51 = vpop.xlane.xlu0 %367 }
 0x14d   : > { %v2498_v27 = vmul.f32 0.03125, %v364_v50  ;;  %v2512_v48 = vmul.f32 0.03125, %v368_v51 }
 0x14f   : > { %v474_v36 = vmul.f32 %v2498_v27, %v2498_v27  ;;  %v476_v51 = vmul.f32 %v2512_v48, %v2512_v48 }
 0x150   : > { %v366_v54 = vpop.xlane.xlu1 %365  ;;  %v372_v55 = vpop.xlane.xlu0 %371 }
 0x151   : > { %v2504_v33 = vmul.f32 0.03125, %v366_v54 }
 0x153   : > { %v475_v42 = vmul.f32 %v2504_v33, %v2504_v33 }
 0x154   : > { %v370_v56 = vpop.xlane.xlu1 %369  ;;  %v376_v57 = vpop.xlane.xlu0 %375 }
 0x155   : > { %v2508_v37 = vmul.f32 0.03125, %v370_v56  ;;  %v2528_v22 = vmul.f32 0.03125, %v376_v57 }
 0x158   : > { %v374_v60 = vpop.xlane.xlu1 %373  ;;  %v380_v61 = vpop.xlane.xlu0 %379 }
 0x159   : > { %v2518_v56 = vmul.f32 0.03125, %v374_v60 }
 0x15b   : > { %v479_v60 = vmul.f32 %v2518_v56, %v2518_v56 }
 0x15c   : > { %v378_v62 = vpop.xlane.xlu1 %377  ;;  %v2488_v63 = vpop.xlane.xlu0 %383 }
 0x160   : > { %v382_v19 = vpop.xlane.xlu1 %381  ;;  %v2490_v17 = vpop.xlane.xlu0 %387 }
 0x161   : > { %v2534_v59 = vmul.f32 0.03125, %v382_v19 }
 0x164   : > { %v2492_v20 = vpop.xlane.xlu1 %385  ;;  %v2494_v21 = vpop.xlane.xlu0 %391 }
 0x168   : > { %v2500_v28 = vpop.xlane.xlu1 %389  ;;  %v410_v29 = vpop.xlane.xlu0 %409 }
 0x169   : > { %v457_v34 = vmul.f32 0.03125, %v410_v29  ;;  %v2514_v29 = vmul.f32 0.03125, %v372_v55 }
 0x16b   : > { %v489_v35 = vsub.f32 %v457_v34, %v473_v30  ;;  %v477_v30 = vmul.f32 %v2508_v37, %v2508_v37  ;;  %v478_v55 = vmul.f32 %v2514_v29, %v2514_v29 }
 0x16c   : > { %v414_v38 = vpop.xlane.xlu1 %413  ;;  %v412_v41 = vpop.xlane.xlu0 %411 }
 0x16d   : > { %v505_v43 = vmax.f32 %v489_v35, 0.0  ;;  %v459_v44 = vmul.f32 0.03125, %v414_v38  ;;  %v458_v45 = vmul.f32 0.03125, %v412_v41 }
 0x16f   : > { %v521_v49 = vadd.f32 1e-05, %v505_v43  ;;  %v491_v50 = vsub.f32 %v459_v44, %v475_v42  ;;  %v490_v54 = vsub.f32 %v458_v45, %v474_v36  ;;  %v2526_v43 = vmul.f32 0.03125, %v378_v62 }
 0x170   : > { %v418_v34 = vpop.xlane.xlu1 %417  ;;  %v416_v25 = vpop.xlane.xlu0 %415 }
 0x171   : > { %2005 = vrsqrt.f32 %v521_v49  ;;  %v507_v26 = vmax.f32 %v491_v50, 0.0  ;;  %v506_v18 = vmax.f32 %v490_v54, 0.0  ;;  %v461_v35 = vmul.f32 0.03125, %v418_v34 }
 0x172   : > { %v460_v38 = vmul.f32 0.03125, %v416_v25  ;;  %v2530_v25 = vmul.f32 0.03125, %v380_v61  ;;  %v481_v62 = vmul.f32 %v2526_v43, %v2526_v43  ;;  %v2539_v61 = vmul.f32 0.03125, %v2488_v63 }
 0x173   : > { %v523_v41 = vadd.f32 1e-05, %v507_v26  ;;  %v522_v42 = vadd.f32 1e-05, %v506_v18  ;;  %v493_v36 = vsub.f32 %v461_v35, %v477_v30 }
 0x174   : > { %v492_v44 = vsub.f32 %v460_v38, %v476_v51  ;;  %v422_v45 = vpop.xlane.xlu1 %421  ;;  %v420_v49 = vpop.xlane.xlu0 %419  ;;  %v482_v19 = vmul.f32 %v2530_v25, %v2530_v25 }
 0x175   : > { %2007 = vrsqrt.f32 %v523_v41  ;;  %v509_v50 = vmax.f32 %v493_v36, 0.0  ;;  %v463_v54 = vmul.f32 0.03125, %v422_v45  ;;  %v462_v34 = vmul.f32 0.03125, %v420_v49 }
 0x176   : > { %2009 = vrsqrt.f32 %v522_v42  ;;  %v508_v18 = vmax.f32 %v492_v44, 0.0  ;;  %v480_v42 = vmul.f32 %v2528_v22, %v2528_v22 }
 0x177   : > { %v525_v26 = vadd.f32 1e-05, %v509_v50  ;;  %v495_v30 = vsub.f32 %v463_v54, %v479_v60  ;;  %v494_v35 = vsub.f32 %v462_v34, %v478_v55  ;;  %v483_v54 = vmul.f32 %v2534_v59, %v2534_v59 }
 0x178   : > { %v524_v51 = vadd.f32 1e-05, %v508_v18  ;;  %v426_v38 = vpop.xlane.xlu1 %425  ;;  %v424_v41 = vpop.xlane.xlu0 %423  ;;  %v2546_v34 = vmul.f32 0.03125, %v2492_v20 }
 0x179   : > { %2011 = vrsqrt.f32 %v525_v26  ;;  %v511_v36 = vmax.f32 %v495_v30, 0.0  ;;  %v510_v45 = vmax.f32 %v494_v35, 0.0  ;;  %v465_v57 = vmul.f32 0.03125, %v426_v38 }
 0x17a   : > { %2013 = vrsqrt.f32 %v524_v51  ;;  %v464_v55 = vmul.f32 0.03125, %v424_v41  ;;  %v484_v41 = vmul.f32 %v2539_v61, %v2539_v61 }
 0x17b   : > { %v2006_v60 = vpop.eup %2005  ;;  %v527_v44 = vadd.f32 1e-05, %v511_v36  ;;  %v526_v49 = vadd.f32 1e-05, %v510_v45  ;;  %v497_v50 = vsub.f32 %v465_v57, %v481_v62  ;;  %v2556_v45 = vmul.f32 0.03125, %v2490_v17 }
 0x17c   : > { %v496_v18 = vsub.f32 %v464_v55, %v480_v42  ;;  %v430_v26 = vpop.xlane.xlu1 %429  ;;  %v428_v30 = vpop.xlane.xlu0 %427  ;;  %v2549_v63 = vmul.f32 %v2006_v60, %v2289_v2 }
 0x17d   : > { %2015 = vrsqrt.f32 %v527_v44  ;;  %v513_v35 = vmax.f32 %v497_v50, 0.0  ;;  %v467_v51 = vmul.f32 0.03125, %v430_v26  ;;  %v466_v38 = vmul.f32 0.03125, %v428_v30 }
 0x17e   : > { %2017 = vrsqrt.f32 %v526_v49  ;;  %v512_v62 = vmax.f32 %v496_v18, 0.0  ;;  %v569_v36 = vmul.f32 %v2549_v63, %v2496_v24  ;;  %v485_v44 = vmul.f32 %v2546_v34, %v2546_v34 }
 0x17f   : > { %v2008_v20 = vpop.eup %2007  ;;  %v529_v57 = vadd.f32 1e-05, %v513_v35  ;;  %v499_v42 = vsub.f32 %v467_v51, %v483_v54  ;;  %v498_v55 = vsub.f32 %v466_v38, %v482_v19  ;;  %v2561_v50 = vmul.f32 0.03125, %v2500_v28 }
 0x180   : > { %v2010_v60 = vpop.eup %2009  ;;  %v528_v26 = vadd.f32 1e-05, %v512_v62  ;;  %v434_v49 = vpop.xlane.xlu1 %433  ;;  %601 = vrot.lane.b32.xlu1 %v569_v36, %s2170_s20  ;;  %v2565_v18 = vmul.f32 %v2008_v20, %v2284_v1  ;;  %v486_v38 = vmul.f32 %v2556_v45, %v2556_v45 }
 0x181   : > { %v432_v24 = vpop.xlane.xlu0 %431  ;;  %2019 = vrsqrt.f32 %v529_v57  ;;  %v515_v17 = vmax.f32 %v499_v42, 0.0  ;;  %v514_v54 = vmax.f32 %v498_v55, 0.0  ;;  %v469_v19 = vmul.f32 0.03125, %v434_v49 }
 0x182   : > { %2021 = vrsqrt.f32 %v528_v26  ;;  %v468_v30 = vmul.f32 0.03125, %v432_v24  ;;  %v571_v35 = vmul.f32 %v2565_v18, %v2504_v33  ;;  %v2570_v28 = vmul.f32 %v2010_v60, %v2301_v4 }
 0x183   : > { %v2012_v51 = vpop.eup %2011  ;;  %v531_v62 = vadd.f32 1e-05, %v515_v17  ;;  %v530_v36 = vadd.f32 1e-05, %v514_v54  ;;  %v501_v20 = vsub.f32 %v469_v19, %v485_v44  ;;  %v487_v57 = vmul.f32 %v2561_v50, %v2561_v50 }
 0x184   : > { %v2014_v0 = vpop.eup %2013  ;;  %v500_v42 = vsub.f32 %v468_v30, %v484_v41  ;;  %v438_v55 = vpop.xlane.xlu1 %437  ;;  %605 = vrot.lane.b32.xlu1 %v571_v35, %s2170_s20  ;;  %v570_v33 = vmul.f32 %v2570_v28, %v2498_v27  ;;  %v2580_v26 = vmul.f32 %v2012_v51, %v2313_v6 }
 0x185   : > { %v436_v60 = vpop.xlane.xlu0 %435  ;;  %2023 = vrsqrt.f32 %v531_v62  ;;  %v517_v49 = vmax.f32 %v501_v20, 0.0  ;;  %v471_v24 = vmul.f32 0.03125, %v438_v55  ;;  %v2586_v54 = vmul.f32 %v2014_v0, %v2296_v3 }
 0x186   : > { %v470_v17 = vmul.f32 0.03125, %v436_v60  ;;  %2025 = vrsqrt.f32 %v530_v36  ;;  %v516_v44 = vmax.f32 %v500_v42, 0.0  ;;  %603 = vrot.lane.b32.xlu0 %v570_v33, %s2170_s20  ;;  %v573_v41 = vmul.f32 %v2580_v26, %v2508_v37 }
 0x187   : > { %v2016_v19 = vpop.eup %2015  ;;  %v533_v27 = vadd.f32 1e-05, %v517_v49  ;;  %v503_v30 = vsub.f32 %v471_v24, %v487_v57  ;;  %v572_v62 = vmul.f32 %v2586_v54, %v2512_v48 }
 0x188   : > { %v502_v35 = vsub.f32 %v470_v17, %v486_v38  ;;  %v2018_v51 = vpop.eup %2017  ;;  %v532_v53 = vadd.f32 1e-05, %v516_v44  ;;  %v2591_v36 = vmul.f32 %v2016_v19, %v2325_v8 }
 0x189   : > { %2027 = vrsqrt.f32 %v533_v27  ;;  %v519_v20 = vmax.f32 %v503_v30, 0.0  ;;  %607 = vrot.lane.b32.xlu1 %v572_v62, %s2170_s20  ;;  %v558_v37 = vmul.f32 %v2018_v51, %v2308_v5  ;;  %v440_v44 = vpop.xlane.xlu0 %439 }
 0x18a   : > { %v518_v42 = vmax.f32 %v502_v35, 0.0  ;;  %2029 = vrsqrt.f32 %v532_v53  ;;  %609 = vrot.lane.b32.xlu0 %v573_v41, %s2170_s20  ;;  %v575_v0 = vmul.f32 %v2591_v36, %v2518_v56  ;;  %v472_v35 = vmul.f32 0.03125, %v440_v44 }
 0x18b   : > { %v2020_v38 = vpop.eup %2019  ;;  %v535_v57 = vadd.f32 1e-05, %v519_v20  ;;  %v574_v33 = vmul.f32 %v558_v37, %v2514_v29  ;;  %v456_v29 = vmul.f32 0.03125, %v2494_v21 }
 0x18c   : > { %v534_v55 = vadd.f32 1e-05, %v518_v42  ;;  %v2022_v48 = vpop.eup %2021  ;;  %v561_v60 = vmul.f32 %v2020_v38, %v2337_v10 }
 0x18d   : > { %2031 = vrsqrt.f32 %v535_v57  ;;  %v560_v53 = vmul.f32 %v2022_v48, %v2318_v7  ;;  %611 = vrot.lane.b32.xlu1 %v574_v33, %s2170_s20  ;;  %v488_v62 = vmul.f32 %v456_v29, %v456_v29 }
 0x18e   : > { %2033 = vrsqrt.f32 %v534_v55  ;;  %613 = vrot.lane.b32.xlu0 %v575_v0, %s2170_s20  ;;  %v577_v56 = vmul.f32 %v561_v60, %v2526_v43 }
 0x18f   : > { %v2024_v49 = vpop.eup %2023  ;;  %v576_v24 = vmul.f32 %v560_v53, %v2528_v22  ;;  %v504_v0 = vsub.f32 %v472_v35, %v488_v62 }
 0x190   : > { %v2026_v17 = vpop.eup %2025  ;;  %v563_v41 = vmul.f32 %v2024_v49, %v2347_v12 }
 0x191   : > { %v562_v19 = vmul.f32 %v2026_v17, %v2330_v9  ;;  %615 = vrot.lane.b32.xlu1 %v576_v24, %s2170_s20  ;;  %v520_v48 = vmax.f32 %v504_v0, 0.0 }
 0x192   : > { %617 = vrot.lane.b32.xlu0 %v577_v56, %s2170_s20  ;;  %v579_v27 = vmul.f32 %v563_v41, %v2534_v59 }
 0x193   : > { %v2028_v30 = vpop.eup %2027  ;;  %v578_v43 = vmul.f32 %v562_v19, %v2530_v25 }
 0x194   : > { %v2030_v51 = vpop.eup %2029  ;;  %v565_v22 = vmul.f32 %v2028_v30, %v2359_v14 }
 0x195   : > { %v564_v20 = vmul.f32 %v2030_v51, %v2342_v11  ;;  %619 = vrot.lane.b32.xlu1 %v578_v43, %s2170_s20 }
 0x196   : > { %621 = vrot.lane.b32.xlu0 %v579_v27, %s2170_s20  ;;  %v581_v21 = vmul.f32 %v565_v22, %v2546_v34  ;;  %v536_v34 = vadd.f32 1e-05, %v520_v48 }
 0x197   : > { %v2032_v42 = vpop.eup %2031  ;;  %v580_v59 = vmul.f32 %v564_v20, %v2539_v61 }
 0x198   : > { %v2034_v38 = vpop.eup %2033  ;;  %v567_v57 = vmul.f32 %v2032_v42, %v2373_v16  ;;  %2035 = vrsqrt.f32 %v536_v34 }
 0x199   : > { %v566_v25 = vmul.f32 %v2034_v38, %v2354_v13  ;;  %623 = vrot.lane.b32.xlu1 %v580_v59, %s2170_s20 }
 0x19a   : > { %625 = vrot.lane.b32.xlu0 %v581_v21, %s2170_s20  ;;  %v583_v55 = vmul.f32 %v567_v57, %v2561_v50  ;;  %v2171_v50 = vmov 2  }
 0x19b   : > { %v582_v33 = vmul.f32 %v566_v25, %v2556_v45 }
 0x19d   : > { %627 = vrot.lane.b32.xlu1 %v582_v33, %s2170_s20 }
 0x19e   : > { %629 = vrot.lane.b32.xlu0 %v583_v55, %s2170_s20 }
 0x1a1   : > { %672 = vperm.xlu1 %1978, %v2570_v28  }
 0x1a2   : > { %667 = vperm.xlu0 %1977, %v2549_v63   ;;  %v2036_v61 = vpop.eup %2035 }
 0x1a3   : > { %v568_v45 = vmul.f32 %v2036_v61, %v2368_v15 }
 0x1a5   : > { %677 = vperm.xlu1 %1978, %v2565_v18   ;;  %v584_v63 = vmul.f32 %v568_v45, %v456_v29 }
 0x1a6   : > { %687 = vperm.xlu0 %1977, %v2580_v26  }
 0x1a9   : > { %682 = vperm.xlu1 %1978, %v2586_v54  }
 0x1aa   : > { %707 = vperm.xlu0 %1977, %v561_v60  }
 0x1ad   : > { %692 = vperm.xlu1 %1978, %v558_v37  }
 0x1ae   : > { %727 = vperm.xlu0 %1977, %v565_v22  }
 0x1b1   : > { %697 = vperm.xlu1 %1978, %v2591_v36  }
 0x1b2   : > { %1980 = vset.pattern.permute.xlu0 %v2171_v50 }
 0x1b5   : > { %631 = vrot.lane.b32.xlu1 %v584_v63, %s2170_s20 }
 0x1b9   : > { %702 = vperm.xlu1 %1978, %v560_v53  }
 0x1bd   : > { %712 = vperm.xlu1 %1978, %v562_v19  }
 0x1c1   : > { %717 = vperm.xlu1 %1978, %v563_v41  }
 0x1c5   : > { %722 = vperm.xlu1 %1978, %v564_v20  }
 0x1c9   : > { %732 = vperm.xlu1 %1978, %v566_v25  }
 0x1cd   : > { %737 = vperm.xlu1 %1978, %v567_v57  }
 0x1d1   : > { %742 = vperm.xlu1 %1978, %v568_v45  }
 0x1d5   : > { %1979 = vset.pattern.permute.xlu1 %v2171_v50 }
 0x1f2   : > { %v602_v18 = vpop.permute.xlu1 %601 }
 0x1f3   : > { %v649_v28 = vsub.f32 %v2289_v2, %v602_v18 }
 0x1f5   : > { %763 = vperm.xlu1 %1979, %v649_v28  }
 0x1f6   : > { %v606_v26 = vpop.permute.xlu1 %605 }
 0x1f7   : > { %v651_v53 = vsub.f32 %v2284_v1, %v606_v26 }
 0x1f8   : > { %v604_v54 = vpop.permute.xlu0 %603 }
 0x1f9   : > { %v650_v36 = vsub.f32 %v2301_v4, %v604_v54 }
 0x1fb   : > { %768 = vperm.xlu0 %1980, %v650_v36   ;;  %v608_v37 = vpop.permute.xlu1 %607 }
 0x1fc   : > { %v610_v60 = vpop.permute.xlu0 %609  ;;  %v652_v56 = vsub.f32 %v2296_v3, %v608_v37 }
 0x1fd   : > { %v653_v17 = vsub.f32 %v2313_v6, %v610_v60 }
 0x1fe   : > { %778 = vperm.xlu1 %1979, %v652_v56  }
 0x1ff   : > { %773 = vperm.xlu0 %1980, %v651_v53   ;;  %v612_v49 = vpop.permute.xlu1 %611 }
 0x200   : > { %v614_v24 = vpop.permute.xlu0 %613  ;;  %v654_v2 = vsub.f32 %v2308_v5, %v612_v49 }
 0x201   : > { %v655_v4 = vsub.f32 %v2325_v8, %v614_v24 }
 0x202   : > { %783 = vperm.xlu1 %1979, %v653_v17  }
 0x203   : > { %788 = vperm.xlu0 %1980, %v654_v2   ;;  %v616_v44 = vpop.permute.xlu1 %615 }
 0x204   : > { %v618_v41 = vpop.permute.xlu0 %617  ;;  %v656_v29 = vsub.f32 %v2318_v7, %v616_v44 }
 0x205   : > { %v657_v19 = vsub.f32 %v2337_v10, %v618_v41 }
 0x206   : > { %798 = vperm.xlu1 %1979, %v656_v29  }
 0x207   : > { %793 = vperm.xlu0 %1980, %v655_v4   ;;  %v620_v1 = vpop.permute.xlu1 %619 }
 0x208   : > { %v622_v3 = vpop.permute.xlu0 %621  ;;  %v658_v27 = vsub.f32 %v2330_v9, %v620_v1 }
 0x209   : > { %v659_v30 = vsub.f32 %v2347_v12, %v622_v3 }
 0x20a   : > { %803 = vperm.xlu1 %1979, %v657_v19  }
 0x20b   : > { %808 = vperm.xlu0 %1980, %v658_v27   ;;  %v624_v6 = vpop.permute.xlu1 %623 }
 0x20c   : > { %v626_v5 = vpop.permute.xlu0 %625  ;;  %v660_v35 = vsub.f32 %v2342_v11, %v624_v6 }
 0x20d   : > { %v661_v7 = vsub.f32 %v2359_v14, %v626_v5  ;;  %v2859_v5 = vld [vmem:[#allocation10_spill] sm:$0xff] }
 0x20e   : > { %818 = vperm.xlu1 %1979, %v660_v35  }
 0x20f   : > { %813 = vperm.xlu0 %1980, %v659_v30   ;;  %v628_v8 = vpop.permute.xlu1 %627 }
 0x210   : > { %v662_v43 = vsub.f32 %v2354_v13, %v628_v8  ;;  %v630_v51 = vpop.permute.xlu0 %629 }
 0x211   : > { %v663_v9 = vsub.f32 %v2373_v16, %v630_v51 }
 0x212   : > { %823 = vperm.xlu1 %1979, %v661_v7  }
 0x213   : > { %828 = vperm.xlu0 %1980, %v662_v43  }
 0x217   : > { %833 = vperm.xlu0 %1980, %v663_v9  }
 0x220   : > { %v673_v10 = vpop.permute.xlu1 %672 }
 0x221   : > { %v668_v13 = vpop.permute.xlu0 %667  ;;  %v746_v34 = vmul.f32 %v673_v10, %v2394_v31  ;;  %v2861_v10 = vld [vmem:[#allocation12_spill] sm:$0xff] }
 0x222   : > { %v745_v61 = vmul.f32 %v668_v13, %v2388_v23  ;;  %v2863_v13 = vld [vmem:[#allocation14_spill] sm:$0xff] }
 0x224   : > { %v678_v22 = vpop.permute.xlu1 %677 }
 0x225   : > { %v688_v57 = vpop.permute.xlu0 %687  ;;  %v747_v63 = vmul.f32 %v678_v22, %v2404_v39 }
 0x226   : > { %v749_v60 = vmul.f32 %v688_v57, %v2413_v46  ;;  %v2857_v46 = vld [vmem:[#allocation9_spill] sm:$0xff] }
 0x228   : > { %v683_v62 = vpop.permute.xlu1 %682 }
 0x229   : > { %v708_v55 = vpop.permute.xlu0 %707  ;;  %v748_v18 = vmul.f32 %v683_v62, %v2397_v32 }
 0x22c   : > { %v693_v20 = vpop.permute.xlu1 %692 }
 0x22d   : > { %v728_v48 = vpop.permute.xlu0 %727  ;;  %v750_v31 = vmul.f32 %v693_v20, %v2407_v40  ;;  %v753_v40 = vmul.f32 %v708_v55, %v2429_v58  ;;  %v2860_v58 = vld [vmem:[#allocation13_spill] sm:$0xff] }
 0x22e   : > { %v757_v9 = vmul.f32 %v728_v48, %v2860_v58 }
 0x230   : > { %v698_v12 = vpop.permute.xlu1 %697 }
 0x231   : > { %v751_v32 = vmul.f32 %v698_v12, %v2421_v52  ;;  %v2858_v52 = vld [vmem:[#allocation11_spill] sm:$0xff] }
 0x234   : > { %v632_v21 = vpop.permute.xlu1 %631 }
 0x235   : > { %v664_v11 = vsub.f32 %v2368_v15, %v632_v21 }
 0x237   : > { %838 = vperm.xlu1 %1979, %v664_v11  }
 0x238   : > { %v703_v42 = vpop.permute.xlu1 %702 }
 0x239   : > { %v752_v39 = vmul.f32 %v703_v42, %v2416_v47 }
 0x23c   : > { %v713_v0 = vpop.permute.xlu1 %712 }
 0x23d   : > { %v754_v29 = vmul.f32 %v713_v0, %v2857_v46 }
 0x240   : > { %v718_v14 = vpop.permute.xlu1 %717 }
 0x241   : > { %v755_v47 = vmul.f32 %v718_v14, %v2858_v52  ;;  %v2862_v14 = vld [vmem:[#allocation15_spill] sm:$0xff] }
 0x244   : > { %v723_v59 = vpop.permute.xlu1 %722 }
 0x245   : > { %v756_v30 = vmul.f32 %v723_v59, %v2859_v5 }
 0x248   : > { %v733_v38 = vpop.permute.xlu1 %732 }
 0x249   : > { %v758_v22 = vmul.f32 %v733_v38, %v2861_v10 }
 0x24c   : > { %v738_v25 = vpop.permute.xlu1 %737 }
 0x24d   : > { %v759_v59 = vmul.f32 %v738_v25, %v2862_v14 }
 0x250   : > { %v743_v16 = vpop.permute.xlu1 %742 }
 0x251   : > { %v760_v57 = vmul.f32 %v743_v16, %v2863_v13 }
 0x274   : > { %v764_v33 = vpop.permute.xlu1 %763 }
 0x275   : > { %v841_v50 = vadd.f32 %v764_v33, %v745_v61 }
 0x27a   : > { %v769_v45 = vpop.permute.xlu0 %768 }
 0x27b   : > { %v842_v15 = vadd.f32 %v769_v45, %v746_v34 }
 0x27d   : > { %v857_v28 = vpack.c.bf16 %v842_v15, %v841_v50  ;;  %v779_v26 = vpop.permute.xlu1 %778 }
 0x27e   : > { %v774_v54 = vpop.permute.xlu0 %773  ;;  %v844_v36 = vadd.f32 %v779_v26, %v748_v18 }
 0x27f   : > { %v843_v37 = vadd.f32 %v774_v54, %v747_v63  ;;  %873 = vrot.lane.b32.xlu0 %v857_v28, %s2172_s25 }
 0x281   : > { %v858_v23 = vpack.c.bf16 %v844_v36, %v843_v37  ;;  %v784_v53 = vpop.permute.xlu1 %783 }
 0x282   : > { %v789_v56 = vpop.permute.xlu0 %788  ;;  %v845_v49 = vadd.f32 %v784_v53, %v749_v60 }
 0x283   : > { %v846_v24 = vadd.f32 %v789_v56, %v750_v31  ;;  %875 = vrot.lane.b32.xlu1 %v858_v23, %s2172_s25  ;;  %v1981_v31 = vld [vmem:[#allocation3 + $0x40] sm:$0xff]  }
 0x284   : > { %v1982_v23 = vld [vmem:[#allocation3] sm:$0xff]   ;;  %1786 = vmatprep.mubr.bf16.mxu1 %v1981_v31 }
 0x285   : > { %v859_v17 = vpack.c.bf16 %v846_v24, %v845_v49  ;;  %v799_v2 = vpop.permute.xlu1 %798  ;;  %1818 = vmatprep.mubr.bf16.mxu0 %v1982_v23  ;;  %v1984_v49 = vld [vmem:[#allocation3 + $0x8] sm:$0xff]   ;;  %v1986_v24 = vld [vmem:[#allocation3 + $0x10] sm:$0xff]  }
 0x286   : > { %v794_v44 = vpop.permute.xlu0 %793  ;;  %v848_v41 = vadd.f32 %v799_v2, %v752_v39  ;;  %v1990_v39 = vld [vmem:[#allocation3 + $0x20] sm:$0xff]   ;;  %v1994_v2 = vld [vmem:[#allocation3 + $0x30] sm:$0xff]  }
 0x287   : > { %v847_v4 = vadd.f32 %v794_v44, %v751_v32  ;;  %877 = vrot.lane.b32.xlu0 %v859_v17, %s2172_s25  ;;  %v1988_v32 = vld [vmem:[#allocation3 + $0x18] sm:$0xff]   ;;  %v1992_v17 = vld [vmem:[#allocation3 + $0x28] sm:$0xff]  }
 0x288   : > { %v1996_v44 = vld [vmem:[#allocation3 + $0x38] sm:$0xff]  }
 0x289   : > { %v860_v1 = vpack.c.bf16 %v848_v41, %v847_v4  ;;  %v804_v3 = vpop.permute.xlu1 %803  ;;  %v1997_v41 = vld [vmem:[#allocation3 + $0x80] sm:$0xff]  }
 0x28a   : > { %v809_v19 = vpop.permute.xlu0 %808  ;;  %v849_v27 = vadd.f32 %v804_v3, %v753_v40 }
 0x28b   : > { %v850_v6 = vadd.f32 %v809_v19, %v754_v29  ;;  %879 = vrot.lane.b32.xlu1 %v860_v1, %s2172_s25 }
 0x28d   : > { %v861_v35 = vpack.c.bf16 %v850_v6, %v849_v27  ;;  %v819_v8 = vpop.permute.xlu1 %818 }
 0x28e   : > { %v814_v7 = vpop.permute.xlu0 %813  ;;  %v852_v43 = vadd.f32 %v819_v8, %v756_v30 }
 0x28f   : > { %v851_v51 = vadd.f32 %v814_v7, %v755_v47  ;;  %881 = vrot.lane.b32.xlu0 %v861_v35, %s2172_s25 }
 0x291   : > { %v862_v62 = vpack.c.bf16 %v852_v43, %v851_v51  ;;  %v824_v20 = vpop.permute.xlu1 %823 }
 0x292   : > { %v829_v12 = vpop.permute.xlu0 %828  ;;  %v853_v21 = vadd.f32 %v824_v20, %v757_v9 }
 0x293   : > { %v854_v11 = vadd.f32 %v829_v12, %v758_v22  ;;  %883 = vrot.lane.b32.xlu1 %v862_v62, %s2172_s25  ;;  %v1983_v12 = vld [vmem:[#allocation3 + $0x48] sm:$0xff]  }
 0x295   : > { %v863_v42 = vpack.c.bf16 %v854_v11, %v853_v21 }
 0x296   : > { %v834_v0 = vpop.permute.xlu0 %833 }
 0x297   : > { %885 = vrot.lane.b32.xlu0 %v863_v42, %s2172_s25  ;;  %v855_v33 = vadd.f32 %v834_v0, %v759_v59  ;;  %v1985_v42 = vld [vmem:[#allocation3 + $0x50] sm:$0xff]  }
 0x2b6   : > { %v839_v55 = vpop.permute.xlu1 %838 }
 0x2b7   : > { %v856_v48 = vadd.f32 %v839_v55, %v760_v57  ;;  %v1987_v57 = vld [vmem:[#allocation3 + $0x58] sm:$0xff]  }
 0x2b9   : > { %v864_v34 = vpack.c.bf16 %v856_v48, %v855_v33  ;;  %v1989_v48 = vld [vmem:[#allocation3 + $0x60] sm:$0xff]  }
 0x2bb   : > { %887 = vrot.lane.b32.xlu1 %v864_v34, %s2172_s25 }
 0x2f1   : > { %v874_v61 = vpop.permute.xlu0 %873 }
 0x2f2   : > { %1802 = vmatprep.subr.msk.bf16.mxu0 %vm2675_vm9, %v874_v61  ;;  %1006 = vrot.lane.b32.xlu1 %v874_v61, %s2173_s27  ;;  %v892_v25 = vsel %vm889_vm8, 0, %v874_v61 }
 0x2f3   : > { %1803 = vmatpush3.bf16.msk.msra.mxu0 %vm2675_vm9, %v874_v61  ;;  %1004 = vrot.lane.b32.xlu0 %v892_v25, %s2173_s27 }
 0x2f5   : > { %v876_v16 = vpop.permute.xlu1 %875 }
 0x2f6   : > { %1804 = vmatprep.subr.msk.bf16.mxu0 %vm2675_vm9, %v876_v16  ;;  %1010 = vrot.lane.b32.xlu1 %v876_v16, %s2173_s27  ;;  %v895_v45 = vsel %vm889_vm8, 0, %v876_v16 }
 0x2f7   : > { %1805 = vmatpush3.bf16.msk.msra.mxu0 %vm2675_vm9, %v876_v16  ;;  %1008 = vrot.lane.b32.xlu0 %v895_v45, %s2173_s27 }
 0x2f9   : > { %v878_v50 = vpop.permute.xlu0 %877 }
 0x2fa   : > { %1806 = vmatprep.subr.msk.bf16.mxu0 %vm2675_vm9, %v878_v50  ;;  %1014 = vrot.lane.b32.xlu1 %v878_v50, %s2173_s27  ;;  %v898_v15 = vsel %vm889_vm8, 0, %v878_v50 }
 0x2fb   : > { %1807 = vmatpush3.bf16.msk.msra.mxu0 %vm2675_vm9, %v878_v50  ;;  %1012 = vrot.lane.b32.xlu0 %v898_v15, %s2173_s27 }
 0x2fd   : > { %v880_v63 = vpop.permute.xlu1 %879 }
 0x2fe   : > { %1808 = vmatprep.subr.msk.bf16.mxu0 %vm2675_vm9, %v880_v63  ;;  %1018 = vrot.lane.b32.xlu1 %v880_v63, %s2173_s27  ;;  %v901_v18 = vsel %vm889_vm8, 0, %v880_v63 }
 0x2ff   : > { %1809 = vmatpush3.bf16.msk.msra.mxu0 %vm2675_vm9, %v880_v63  ;;  %1016 = vrot.lane.b32.xlu0 %v901_v18, %s2173_s27 }
 0x301   : > { %v882_v28 = vpop.permute.xlu0 %881 }
 0x302   : > { %1810 = vmatprep.subr.msk.bf16.mxu0 %vm2675_vm9, %v882_v28  ;;  %1022 = vrot.lane.b32.xlu1 %v882_v28, %s2173_s27  ;;  %v904_v26 = vsel %vm889_vm8, 0, %v882_v28 }
 0x303   : > { %1811 = vmatpush3.bf16.msk.msra.mxu0 %vm2675_vm9, %v882_v28  ;;  %1020 = vrot.lane.b32.xlu0 %v904_v26, %s2173_s27 }
 0x305   : > { %v884_v54 = vpop.permute.xlu1 %883 }
 0x306   : > { %1812 = vmatprep.subr.msk.bf16.mxu0 %vm2675_vm9, %v884_v54  ;;  %1026 = vrot.lane.b32.xlu1 %v884_v54, %s2173_s27  ;;  %v907_v36 = vsel %vm889_vm8, 0, %v884_v54 }
 0x307   : > { %1813 = vmatpush3.bf16.msk.msra.mxu0 %vm2675_vm9, %v884_v54  ;;  %1024 = vrot.lane.b32.xlu0 %v907_v36, %s2173_s27 }
 0x309   : > { %v886_v37 = vpop.permute.xlu0 %885 }
 0x30a   : > { %1814 = vmatprep.subr.msk.bf16.mxu0 %vm2675_vm9, %v886_v37  ;;  %1030 = vrot.lane.b32.xlu1 %v886_v37, %s2173_s27  ;;  %v910_v60 = vsel %vm889_vm8, 0, %v886_v37 }
 0x30b   : > { %1815 = vmatpush3.bf16.msk.msra.mxu0 %vm2675_vm9, %v886_v37  ;;  %1028 = vrot.lane.b32.xlu0 %v910_v60, %s2173_s27 }
 0x32d   : > { %v888_v53 = vpop.permute.xlu1 %887 }
 0x32e   : > { %1816 = vmatprep.subr.msk.bf16.mxu0 %vm2675_vm9, %v888_v53  ;;  %1034 = vrot.lane.b32.xlu1 %v888_v53, %s2173_s27  ;;  %v913_v56 = vsel %vm889_vm8, 0, %v888_v53 }
 0x32f   : > { %1817 = vmatpush3.bf16.msk.msra.mxu0 %vm2675_vm9, %v888_v53  ;;  %1032 = vrot.lane.b32.xlu0 %v913_v56, %s2173_s27 }
 0x332   : > { %1362 = vrot.lane.b32.xlu1 %v874_v61, %s2174_s24  ;;  %1819 = vmatmul.mubr.bf16.vlgmr.msra.gmra.mrb[0].mxu0 %v1984_v49  ;;  %v1999_v49 = vld [vmem:[#allocation3 + $0x88] sm:$0xff]  }
 0x333   : > { %1360 = vrot.lane.b32.xlu0 %v892_v25, %s2174_s24  ;;  %1822 = vmatprep.mubr.bf16.mxu0 %v1986_v24  ;;  %v2000_v24 = vld [vmem:[#allocation3 + $0xa8] sm:$0xff]  }
 0x336   : > { %1366 = vrot.lane.b32.xlu1 %v876_v16, %s2174_s24  ;;  %v1991_v16 = vld [vmem:[#allocation3 + $0x68] sm:$0xff]  }
 0x337   : > { %1364 = vrot.lane.b32.xlu0 %v895_v45, %s2174_s24 }
 0x33a   : > { %1370 = vrot.lane.b32.xlu1 %v878_v50, %s2174_s24  ;;  %1823 = vmatmul.mubr.bf16.gmra.mrb[4].mxu0 %v1988_v32  ;;  %v2001_v32 = vld [vmem:[#allocation3 + $0x90] sm:$0xff]  }
 0x33b   : > { %1368 = vrot.lane.b32.xlu0 %v898_v15, %s2174_s24  ;;  %1826 = vmatprep.mubr.bf16.mxu0 %v1990_v39  ;;  %v1993_v15 = vld [vmem:[#allocation3 + $0x70] sm:$0xff]  }
 0x33c   : > { %v2002_v39 = vld [vmem:[#allocation3 + $0xb0] sm:$0xff]  }
 0x33e   : > { %1374 = vrot.lane.b32.xlu1 %v880_v63, %s2174_s24 }
 0x33f   : > { %1372 = vrot.lane.b32.xlu0 %v901_v18, %s2174_s24 }
 0x342   : > { %1378 = vrot.lane.b32.xlu1 %v882_v28, %s2174_s24  ;;  %1827 = vmatmul.mubr.bf16.gmra.mrb[8].mxu0 %v1992_v17  ;;  %v2003_v17 = vld [vmem:[#allocation3 + $0x98] sm:$0xff]  }
 0x343   : > { %1376 = vrot.lane.b32.xlu0 %v904_v26, %s2174_s24  ;;  %1830 = vmatprep.mubr.bf16.mxu0 %v1994_v2  ;;  %v2004_v2 = vld [vmem:[#allocation3 + $0xb8] sm:$0xff]  }
 0x346   : > { %1382 = vrot.lane.b32.xlu1 %v884_v54, %s2174_s24  ;;  %v1995_v54 = vld [vmem:[#allocation3 + $0x78] sm:$0xff]  }
 0x347   : > { %1380 = vrot.lane.b32.xlu0 %v907_v36, %s2174_s24 }
 0x34a   : > { %1386 = vrot.lane.b32.xlu1 %v886_v37, %s2174_s24  ;;  %1831 = vmatmul.mubr.bf16.gmra.mrb[12].mxu0 %v1996_v44 }
 0x34b   : > { %1384 = vrot.lane.b32.xlu0 %v910_v60, %s2174_s24  ;;  %1850 = vmatprep.mubr.bf16.mxu0 %v1997_v41  ;;  %v1998_v60 = vld [vmem:[#allocation3 + $0xa0] sm:$0xff]  }
 0x34e   : > { %1390 = vrot.lane.b32.xlu1 %v888_v53, %s2174_s24 }
 0x34f   : > { %1388 = vrot.lane.b32.xlu0 %v913_v56, %s2174_s24 }
 0x364   : > { %v1007_v4 = vpop.permute.xlu1 %1006 }
 0x365   : > { %v1005_v40 = vpop.permute.xlu0 %1004 }
 0x366   : > { %v1037_v46 = vsel %vm1036_vm10, %v1005_v40, %v1007_v4 }
 0x367   : > { %1770 = vmatprep.subr.bf16.mxu1 %v1037_v46 }
 0x368   : > { %v1011_v29 = vpop.permute.xlu1 %1010  ;;  %1771 = vmatpush3.bf16.msra.mxu1 %v1037_v46 }
 0x369   : > { %v1009_v1 = vpop.permute.xlu0 %1008 }
 0x36a   : > { %v1038_v3 = vsel %vm1036_vm10, %v1009_v1, %v1011_v29 }
 0x36b   : > { %1772 = vmatprep.subr.bf16.mxu1 %v1038_v3 }
 0x36c   : > { %v1015_v19 = vpop.permute.xlu1 %1014  ;;  %1773 = vmatpush3.bf16.msra.mxu1 %v1038_v3 }
 0x36d   : > { %v1013_v27 = vpop.permute.xlu0 %1012 }
 0x36e   : > { %v1039_v6 = vsel %vm1036_vm10, %v1013_v27, %v1015_v19 }
 0x36f   : > { %1774 = vmatprep.subr.bf16.mxu1 %v1039_v6 }
 0x370   : > { %v1019_v52 = vpop.permute.xlu1 %1018  ;;  %1775 = vmatpush3.bf16.msra.mxu1 %v1039_v6 }
 0x371   : > { %v1017_v47 = vpop.permute.xlu0 %1016 }
 0x372   : > { %v1040_v5 = vsel %vm1036_vm10, %v1017_v47, %v1019_v52 }
 0x373   : > { %1776 = vmatprep.subr.bf16.mxu1 %v1040_v5 }
 0x374   : > { %v1023_v30 = vpop.permute.xlu1 %1022  ;;  %1777 = vmatpush3.bf16.msra.mxu1 %v1040_v5 }
 0x375   : > { %v1021_v35 = vpop.permute.xlu0 %1020 }
 0x376   : > { %v1041_v8 = vsel %vm1036_vm10, %v1021_v35, %v1023_v30 }
 0x377   : > { %1778 = vmatprep.subr.bf16.mxu1 %v1041_v8 }
 0x378   : > { %v1027_v7 = vpop.permute.xlu1 %1026  ;;  %1779 = vmatpush3.bf16.msra.mxu1 %v1041_v8 }
 0x379   : > { %v1025_v43 = vpop.permute.xlu0 %1024 }
 0x37a   : > { %v1042_v51 = vsel %vm1036_vm10, %v1025_v43, %v1027_v7 }
 0x37b   : > { %1780 = vmatprep.subr.bf16.mxu1 %v1042_v51 }
 0x37c   : > { %1781 = vmatpush3.bf16.msra.mxu1 %v1042_v51  ;;  %v1031_v58 = vpop.permute.xlu1 %1030 }
 0x37d   : > { %v1029_v9 = vpop.permute.xlu0 %1028 }
 0x37e   : > { %v1043_v10 = vsel %vm1036_vm10, %v1029_v9, %v1031_v58 }
 0x37f   : > { %1782 = vmatprep.subr.bf16.mxu1 %v1043_v10 }
 0x380   : > { %1783 = vmatpush3.bf16.msra.mxu1 %v1043_v10 }
 0x3a0   : > { %v1035_v22 = vpop.permute.xlu1 %1034 }
 0x3a1   : > { %v1033_v62 = vpop.permute.xlu0 %1032 }
 0x3a2   : > { %v1044_v20 = vsel %vm1036_vm10, %v1033_v62, %v1035_v22 }
 0x3a3   : > { %1784 = vmatprep.subr.bf16.mxu1 %v1044_v20 }
 0x3a4   : > { %1785 = vmatpush3.bf16.msra.mxu1 %v1044_v20  ;;  %v1363_v21 = vpop.permute.xlu1 %1362 }
 0x3a5   : > { %v1361_v11 = vpop.permute.xlu0 %1360 }
 0x3a6   : > { %v1393_v0 = vsel %vm1392_vm11, %v1361_v11, %v1363_v21 }
 0x3a7   : > { %1787 = vmatmul.mubr.bf16.vlgmr.msra.gmra.mrb[0].mxu1 %v1983_v12  ;;  %1834 = vmatprep.subr.bf16.mxu0 %v1393_v0 }
 0x3a8   : > { %1866 = vmatprep.subr.bf16.mxu1 %v1393_v0  ;;  %1835 = vmatpush3.bf16.msra.mxu0 %v1393_v0  ;;  %v1367_v14 = vpop.permute.xlu1 %1366 }
 0x3a9   : > { %1874 = vmatpush3.bf16.msra.mxu1 %v1393_v0  ;;  %v1365_v59 = vpop.permute.xlu0 %1364  ;;  %1790 = vmatprep.mubr.bf16.mxu1 %v1985_v42 }
 0x3aa   : > { %v1394_v13 = vsel %vm1392_vm11, %v1365_v59, %v1367_v14 }
 0x3ab   : > { %1836 = vmatprep.subr.bf16.mxu0 %v1394_v13  ;;  %1867 = vmatprep.subr.bf16.mxu1 %v1394_v13 }
 0x3ac   : > { %1837 = vmatpush3.bf16.msra.mxu0 %v1394_v13  ;;  %v1371_v55 = vpop.permute.xlu1 %1370 }
 0x3ad   : > { %1875 = vmatpush3.bf16.msra.mxu1 %v1394_v13  ;;  %v1369_v33 = vpop.permute.xlu0 %1368 }
 0x3ae   : > { %v1395_v34 = vsel %vm1392_vm11, %v1369_v33, %v1371_v55 }
 0x3af   : > { %1791 = vmatmul.mubr.bf16.gmra.mrb[4].mxu1 %v1987_v57  ;;  %1838 = vmatprep.subr.bf16.mxu0 %v1395_v34 }
 0x3b0   : > { %1868 = vmatprep.subr.bf16.mxu1 %v1395_v34  ;;  %1839 = vmatpush3.bf16.msra.mxu0 %v1395_v34  ;;  %v1375_v38 = vpop.permute.xlu1 %1374 }
 0x3b1   : > { %1876 = vmatpush3.bf16.msra.mxu1 %v1395_v34  ;;  %v1373_v61 = vpop.permute.xlu0 %1372  ;;  %1794 = vmatprep.mubr.bf16.mxu1 %v1989_v48 }
 0x3b2   : > { %v1396_v25 = vsel %vm1392_vm11, %v1373_v61, %v1375_v38 }
 0x3b3   : > { %1840 = vmatprep.subr.bf16.mxu0 %v1396_v25  ;;  %1869 = vmatprep.subr.bf16.mxu1 %v1396_v25 }
 0x3b4   : > { %1841 = vmatpush3.bf16.msra.mxu0 %v1396_v25  ;;  %v1379_v45 = vpop.permute.xlu1 %1378 }
 0x3b5   : > { %1877 = vmatpush3.bf16.msra.mxu1 %v1396_v25  ;;  %v1377_v50 = vpop.permute.xlu0 %1376 }
 0x3b6   : > { %v1397_v63 = vsel %vm1392_vm11, %v1377_v50, %v1379_v45 }
 0x3b7   : > { %1795 = vmatmul.mubr.bf16.gmra.mrb[8].mxu1 %v1991_v16  ;;  %1842 = vmatprep.subr.bf16.mxu0 %v1397_v63 }
 0x3b8   : > { %1870 = vmatprep.subr.bf16.mxu1 %v1397_v63  ;;  %1843 = vmatpush3.bf16.msra.mxu0 %v1397_v63  ;;  %v1383_v18 = vpop.permute.xlu1 %1382 }
 0x3b9   : > { %1878 = vmatpush3.bf16.msra.mxu1 %v1397_v63  ;;  %v1381_v28 = vpop.permute.xlu0 %1380  ;;  %1798 = vmatprep.mubr.bf16.mxu1 %v1993_v15 }
 0x3ba   : > { %v1398_v26 = vsel %vm1392_vm11, %v1381_v28, %v1383_v18 }
 0x3bb   : > { %1844 = vmatprep.subr.bf16.mxu0 %v1398_v26  ;;  %1871 = vmatprep.subr.bf16.mxu1 %v1398_v26 }
 0x3bc   : > { %1845 = vmatpush3.bf16.msra.mxu0 %v1398_v26  ;;  %v1387_v36 = vpop.permute.xlu1 %1386 }
 0x3bd   : > { %1879 = vmatpush3.bf16.msra.mxu1 %v1398_v26  ;;  %v1385_v37 = vpop.permute.xlu0 %1384 }
 0x3be   : > { %v1399_v31 = vsel %vm1392_vm11, %v1385_v37, %v1387_v36 }
 0x3bf   : > { %1799 = vmatmul.mubr.bf16.gmra.mrb[12].mxu1 %v1995_v54  ;;  %1846 = vmatprep.subr.bf16.mxu0 %v1399_v31 }
 0x3c0   : > { %1872 = vmatprep.subr.bf16.mxu1 %v1399_v31  ;;  %1847 = vmatpush3.bf16.msra.mxu0 %v1399_v31  ;;  %v1391_v23 = vpop.permute.xlu1 %1390 }
 0x3c1   : > { %1880 = vmatpush3.bf16.msra.mxu1 %v1399_v31  ;;  %v1389_v53 = vpop.permute.xlu0 %1388  ;;  %1858 = vmatprep.mubr.bf16.mxu1 %v1998_v60 }
 0x3c2   : > { %v1400_v56 = vsel %vm1392_vm11, %v1389_v53, %v1391_v23 }
 0x3c3   : > { %1848 = vmatprep.subr.bf16.mxu0 %v1400_v56  ;;  %1873 = vmatprep.subr.bf16.mxu1 %v1400_v56 }
 0x3c4   : > { %1849 = vmatpush3.bf16.msra.mxu0 %v1400_v56 }
 0x3c5   : > { %1881 = vmatpush3.bf16.msra.mxu1 %v1400_v56 }
 0x3c7   : > { %1851 = vmatmul.mubr.bf16.vlgmr.msra.gmra.mrb[0].mxu0 %v1999_v49 }
 0x3c8   : > { %1859 = vmatmul.mubr.bf16.vlgmr.msra.gmra.mrb[16].mxu1 %v2000_v24  ;;  %1854 = vmatprep.mubr.bf16.mxu0 %v2001_v32 }
 0x3c9   : > { %1862 = vmatprep.mubr.bf16.mxu1 %v2002_v39 }
 0x3cf   : > { %1855 = vmatmul.mubr.bf16.gmra.mrb[4].mxu0 %v2003_v17 }
 0x3d0   : > { %1863 = vmatmul.mubr.bf16.gmra.mrb[20].mxu1 %v2004_v2 }
 0x415   : > { %v1828_v44 = vpop.f32.mrb[8].mxu0 }
 0x416   : > { %v1264_v41 = vpop.f32.mrb[9].mxu0 }
 0x417   : > { %v1829_v4 = vpop.f32.mrb[10].mxu0 }
 0x418   : > { %v1267_v40 = vpop.f32.mrb[11].mxu0 }
 0x41d   : > { %v1832_v46 = vpop.f32.mrb[12].mxu0 }
 0x41e   : > { %v1280_v29 = vpop.f32.mrb[13].mxu0 }
 0x41f   : > { %v1833_v1 = vpop.f32.mrb[14].mxu0 }
 0x420   : > { %v1283_v3 = vpop.f32.mrb[15].mxu0 }
 0x47a   : > { %v1788_v19 = vpop.f32.mrb[0].mxu1 }
 0x47b   : > { %v1087_v27 = vpop.f32.mrb[1].mxu1 }
 0x47c   : > { %v1789_v6 = vpop.f32.mrb[2].mxu1 }
 0x47d   : > { %v1090_v52 = vpop.f32.mrb[3].mxu1 }
 0x482   : > { %v1792_v47 = vpop.f32.mrb[4].mxu1 }
 0x483   : > { %v1103_v5 = vpop.f32.mrb[5].mxu1 }
 0x484   : > { %v1793_v30 = vpop.f32.mrb[6].mxu1 }
 0x485   : > { %v1106_v35 = vpop.f32.mrb[7].mxu1 }
 0x48a   : > { %v1796_v8 = vpop.f32.mrb[8].mxu1 }
 0x48b   : > { %v1273_v7 = vadd.f32 %v1828_v44, %v1796_v8  ;;  %v1119_v43 = vpop.f32.mrb[9].mxu1 }
 0x48c   : > { %v1265_v51 = vadd.f32 %v1264_v41, %v1119_v43  ;;  %v1797_v58 = vpop.f32.mrb[10].mxu1 }
 0x48d   : > { %v1276_v9 = vadd.f32 %v1829_v4, %v1797_v58  ;;  %v1122_v10 = vpop.f32.mrb[11].mxu1 }
 0x48e   : > { %v1268_v22 = vadd.f32 %v1267_v40, %v1122_v10 }
 0x492   : > { %v1800_v62 = vpop.f32.mrb[12].mxu1 }
 0x493   : > { %v1289_v20 = vadd.f32 %v1832_v46, %v1800_v62  ;;  %v1135_v12 = vpop.f32.mrb[13].mxu1 }
 0x494   : > { %v1281_v21 = vadd.f32 %v1280_v29, %v1135_v12  ;;  %v1801_v11 = vpop.f32.mrb[14].mxu1 }
 0x495   : > { %v1292_v42 = vadd.f32 %v1833_v1, %v1801_v11  ;;  %v1138_v0 = vpop.f32.mrb[15].mxu1 }
 0x496   : > { %v1284_v14 = vadd.f32 %v1283_v3, %v1138_v0 }
 0x49a   : > { %v1852_v59 = vpop.f32.mrb[0].mxu0 }
 0x49b   : > { %v2751_v13 = vadd.f32 %v1852_v59, %v1788_v19  ;;  %v1860_v57 = vpop.f32.mrb[16].mxu1  ;;  %v1443_v55 = vpop.f32.mrb[1].mxu0 }
 0x49c   : > { %v1516_v33 = vadd.f32 %v1860_v57, %v1273_v7  ;;  %v2753_v48 = vadd.f32 %v1443_v55, %v1087_v27  ;;  %v1475_v34 = vpop.f32.mrb[17].mxu1  ;;  %v1853_v38 = vpop.f32.mrb[2].mxu0 }
 0x49d   : > { %v1514_v61 = vadd.f32 %v1475_v34, %v1265_v51  ;;  %v2755_v25 = vadd.f32 %v1853_v38, %v1789_v6  ;;  %v1861_v16 = vpop.f32.mrb[18].mxu1  ;;  %v1446_v45 = vpop.f32.mrb[3].mxu0 }
 0x49e   : > { %v1524_v50 = vsub.f32 0.0, %v1516_v33  ;;  %v1517_v15 = vadd.f32 %v1861_v16, %v1276_v9  ;;  %v2757_v63 = vadd.f32 %v1446_v45, %v1090_v52  ;;  %v1478_v18 = vpop.f32.mrb[19].mxu1 }
 0x49f   : > { %v1522_v28 = vsub.f32 0.0, %v1514_v61  ;;  %v1515_v26 = vadd.f32 %v1478_v18, %v1268_v22 }
 0x4a0   : > { %v1534_v54 = vmul.f32 1.442695, %v1524_v50  ;;  %v1525_v36 = vsub.f32 0.0, %v1517_v15 }
 0x4a1   : > { %v1530_v37 = vmul.f32 1.442695, %v1522_v28  ;;  %v1523_v60 = vsub.f32 0.0, %v1515_v26 }
 0x4a2   : > { %2037 = vpow2.f32 %v1534_v54  ;;  %v1536_v31 = vmul.f32 1.442695, %v1525_v36  ;;  %v1856_v23 = vpop.f32.mrb[4].mxu0 }
 0x4a3   : > { %2039 = vpow2.f32 %v1530_v37  ;;  %v1532_v53 = vmul.f32 1.442695, %v1523_v60  ;;  %v2759_v56 = vadd.f32 %v1856_v23, %v1792_v47  ;;  %v1864_v49 = vpop.f32.mrb[20].mxu1  ;;  %v1459_v24 = vpop.f32.mrb[5].mxu0 }
 0x4a4   : > { %2041 = vpow2.f32 %v1536_v31  ;;  %v1520_v32 = vadd.f32 %v1864_v49, %v1289_v20  ;;  %v2761_v39 = vadd.f32 %v1459_v24, %v1103_v5  ;;  %v1491_v17 = vpop.f32.mrb[21].mxu1  ;;  %v1857_v2 = vpop.f32.mrb[6].mxu0 }
 0x4a5   : > { %2043 = vpow2.f32 %v1532_v53  ;;  %v1518_v44 = vadd.f32 %v1491_v17, %v1281_v21  ;;  %v2763_v41 = vadd.f32 %v1857_v2, %v1793_v30  ;;  %v1865_v4 = vpop.f32.mrb[22].mxu1  ;;  %v1462_v40 = vpop.f32.mrb[7].mxu0 }
 0x4a6   : > { %v1528_v46 = vsub.f32 0.0, %v1520_v32  ;;  %v1521_v29 = vadd.f32 %v1865_v4, %v1292_v42  ;;  %v2765_v1 = vadd.f32 %v1462_v40, %v1106_v35  ;;  %v1494_v3 = vpop.f32.mrb[23].mxu1 }
 0x4a7   : > { %v1526_v19 = vsub.f32 0.0, %v1518_v44  ;;  %v1519_v27 = vadd.f32 %v1494_v3, %v1284_v14 }
 0x4a8   : > { %v1542_v6 = vmul.f32 1.442695, %v1528_v46  ;;  %v1529_v52 = vsub.f32 0.0, %v1521_v29 }
 0x4a9   : > { %v1538_v47 = vmul.f32 1.442695, %v1526_v19  ;;  %v1527_v5 = vsub.f32 0.0, %v1519_v27 }
 0x4aa   : > { %2045 = vpow2.f32 %v1542_v6  ;;  %v1544_v8 = vmul.f32 1.442695, %v1529_v52 }
 0x4ab   : > { %2047 = vpow2.f32 %v1538_v47  ;;  %v1540_v7 = vmul.f32 1.442695, %v1527_v5 }
 0x4ac   : > { %v2038_v30 = vpop.eup %2037  ;;  %2049 = vpow2.f32 %v1544_v8 }
 0x4ad   : > { %v2040_v43 = vpop.eup %2039  ;;  %v1548_v51 = vadd.f32 1.0, %v2038_v30  ;;  %2051 = vpow2.f32 %v1540_v7 }
 0x4ae   : > { %v2042_v35 = vpop.eup %2041  ;;  %v1546_v58 = vadd.f32 1.0, %v2040_v43 }
 0x4af   : > { %v2044_v9 = vpop.eup %2043  ;;  %2053 = vrcp.f32 %v1548_v51  ;;  %v1549_v10 = vadd.f32 1.0, %v2042_v35 }
 0x4b0   : > { %2055 = vrcp.f32 %v1546_v58  ;;  %v1547_v22 = vadd.f32 1.0, %v2044_v9 }
 0x4b1   : > { %2057 = vrcp.f32 %v1549_v10 }
 0x4b2   : > { %2059 = vrcp.f32 %v1547_v22 }
 0x4b4   : > { %v2046_v62 = vpop.eup %2045 }
 0x4b5   : > { %v2048_v20 = vpop.eup %2047  ;;  %v1552_v12 = vadd.f32 1.0, %v2046_v62 }
 0x4b6   : > { %v2050_v21 = vpop.eup %2049  ;;  %v1550_v11 = vadd.f32 1.0, %v2048_v20 }
 0x4b7   : > { %v2052_v42 = vpop.eup %2051  ;;  %2061 = vrcp.f32 %v1552_v12  ;;  %v1553_v0 = vadd.f32 1.0, %v2050_v21 }
 0x4b8   : > { %2063 = vrcp.f32 %v1550_v11  ;;  %v1551_v14 = vadd.f32 1.0, %v2052_v42 }
 0x4b9   : > { %v2054_v59 = vpop.eup %2053  ;;  %2065 = vrcp.f32 %v1553_v0 }
 0x4ba   : > { %v2056_v57 = vpop.eup %2055  ;;  %v1564_v55 = vmul.f32 %v2054_v59, %v2751_v13  ;;  %2067 = vrcp.f32 %v1551_v14 }
 0x4bb   : > { %v2058_v33 = vpop.eup %2057  ;;  %v1562_v34 = vmul.f32 %v2056_v57, %v2753_v48 }
 0x4bc   : > { %v2060_v38 = vpop.eup %2059  ;;  %1572 = vst [vmem:[%s178_s29 + $0x10] sm:$0xff] %v1564_v55  ;;  %v1565_v61 = vmul.f32 %v2058_v33, %v2755_v25 }
 0x4bd   : > { %1570 = vst [vmem:[%s178_s29] sm:$0xff] %v1562_v34  ;;  %v1563_v16 = vmul.f32 %v2060_v38, %v2757_v63 }
 0x4be   : > { %1573 = vst [vmem:[%s178_s29 + $0x18] sm:$0xff] %v1565_v61 }
 0x4bf   : > { %1571 = vst [vmem:[%s178_s29 + $0x8] sm:$0xff] %v1563_v16 }
 0x4c1   : > { %v2062_v45 = vpop.eup %2061 }
 0x4c2   : > { %v2064_v50 = vpop.eup %2063  ;;  %v1568_v13 = vmul.f32 %v2062_v45, %v2759_v56 }
 0x4c3   : > { %v2066_v15 = vpop.eup %2065  ;;  %v1566_v48 = vmul.f32 %v2064_v50, %v2761_v39 }
 0x4c4   : > { %v2068_v18 = vpop.eup %2067  ;;  %1576 = vst [vmem:[%s178_s29 + $0x30] sm:$0xff] %v1568_v13  ;;  %v1569_v25 = vmul.f32 %v2066_v15, %v2763_v41 }
 0x4c5   : > { %1574 = vst [vmem:[%s178_s29 + $0x20] sm:$0xff] %v1566_v48  ;;  %v1567_v63 = vmul.f32 %v2068_v18, %v2765_v1 }
 0x4c6   : > { %1577 = vst [vmem:[%s178_s29 + $0x38] sm:$0xff] %v1569_v25 }
 0x4c7   : > { %1575 = vst [vmem:[%s178_s29 + $0x28] sm:$0xff] %v1567_v63 }
 0x4c8   : > { %2110 = shalt.err (!%p2107_p7)
}
 0x4c9   : > { %s2111_s17 = scalar_lea.hbm %s2781_s7, 1024  ;;  %s2115_s25 = scalar_lea.hbm %s2832_s3, 2048 }
 0x4ca   : > { %p2112_p8 = scmp.ne.s32.totalorder %s2781_s7, %s2111_s17  ;;  %p2116_p1 = scmp.lt.u32.totalorder %s2781_s7, %s2832_s3 }
 0x4cb   : > { %p2117_p0 = scmp.lt.u32.totalorder %s2115_s25, %s2111_s17  ;;  %p2119_p6 = scmp.lt.u32.totalorder %s2111_s17, %s2781_s7 }
 0x4cc   : > { %p2113_p11 = pnand %p2112_p8, %p2866_p9 }
 0x4cd   : > { %p2118_p5 = por %p2117_p0, %p2116_p1 }
 0x4ce   : > { %p2114_p13 = pneg %p2113_p11 }
 0x4cf   : > { %p2120_p10 = por %p2119_p6, %p2118_p5 }
 0x4d1   : > { %p2121_p12 = pnand %p2120_p10, %p2114_p13 }
 0x4d3   : > { %2124 = shalt.err (!%p2121_p12)
}
 0x4d4   : > { %s2176_s26 = smov 128   ;;  %s2177_s28 = smov 8  }
 0x4d5   : > { %1918 = dma.vmem_to_hbm [thread:$0]  (%p2866_p9), %s2783_s4, 1024, %s2781_s7, %s2788_s16, %s2176_s26, %s2176_s26, %s2177_s28  }
 0x4d6 PF: > { %p1930_p2 = scmp.ge.s32.totalorder %s2163_s15, 2  ;;  %s1607_s29 = sand.u32 1, %s2151_s12  }
 0x4d7   : > { %p2867_p3 = scmp.ne.s32.totalorder %s2844_s23, 0  ;;  %s1608_s30 = scalar_lea.sflag [#allocation5], %s1607_s29 }
 0x4d9   : > { %p1925_p4 = pnand %p1930_p2, %p2867_p3 }
 0x4db   : > { %2146 = dma.done.wait (!%p1925_p4), %s1608_s30, 1024  }
 0x4dc   : > { %2148 = vsyncadd (!%p1925_p4), %s1608_s30, 4294966272  ;;  %p14_p7 = scmp.ge.s32.totalorder %s2223_s18, 4   ;;  %s2868_s12 = smov %s2155_s13 }
 0x4dd   : > { %s2869_s13 = smov %s2159_s14  ;;  %s2870_s14 = smov %s2234_s21 }
 0x4de   : > { %s2871_s15 = smov %s2223_s18  ;;  %16 = sbr.rel (!%p14_p7) target bundleno = 4 (0x4), region = 74 }
 0x4e5   :  { %1613 = vsyncpa [#allocation4], 1 }
 0x4e6   :  { %1615 = vsyncpa [#allocation4 + $0x1], 1 }
 0x4e7   :  { %1616 = vsyncpa [#allocation5], 1 }
 0x4e8   :  { %1618 = vsyncpa [#allocation5 + $0x1], 1 }

</bundles_post_ra>
